<compile_context>
chip_gen: v6e
topology: v6e:2x2x1
jax: 0.10.0
libtpu: 0.0.40
codegen_flags: <defaults>
</compile_context>

<pallas_src>
import math

import jax
import jax.numpy as jnp
from jax.experimental import pallas as pl
from jax.experimental.pallas import tpu as pltpu

NEG_SLOPE = 0.2


def critic_kernel(x_ref,
                  w1_ref, b1_ref,
                  w2_ref, b2_ref,
                  w3_ref, b3_ref,
                  w4_ref, b4_ref,
                  o_ref):
    """Fused 4-layer MLP critic for one batch tile (TB rows)."""

    def leaky_relu(v):                      # f32 VPU math (v5e has no bf16 VPU)
        return jnp.where(v > 0, v, NEG_SLOPE * v)

    x = x_ref[...]                                                  # (TB, Kp) bf16

    h1 = jnp.dot(x, w1_ref[...], preferred_element_type=jnp.float32)
    h1 = leaky_relu(h1 + b1_ref[...])                               # (TB, H) f32

    h2 = jnp.dot(h1.astype(jnp.bfloat16), w2_ref[...],
                 preferred_element_type=jnp.float32)
    h2 = leaky_relu(h2 + b2_ref[...])                               # (TB, 2H) f32

    h3 = jnp.dot(h2.astype(jnp.bfloat16), w3_ref[...],
                 preferred_element_type=jnp.float32)
    h3 = leaky_relu(h3 + b3_ref[...])                               # (TB, 4H) f32

    # Final layer has out_dim == 1: an MXU matmul would use a single systolic
    # column, so do it as a VPU elementwise multiply + lane reduction instead.
    w4_row = w4_ref[...].astype(jnp.float32)                        # (1, 4H)
    out = jnp.sum(h3 * w4_row, axis=-1, keepdims=True) + b4_ref[...]
    o_ref[...] = out.astype(o_ref.dtype)                            # (TB, 1)


def init_critic_params(key, data_dim=50, hidden_dim=64):
    """nn.Linear-style init: U(-1/sqrt(fan_in), 1/sqrt(fan_in)).
    Weights stored as (in_dim, out_dim) in bfloat16, biases in float32."""
    dims = [(data_dim, hidden_dim),
            (hidden_dim, hidden_dim * 2),
            (hidden_dim * 2, hidden_dim * 4),
            (hidden_dim * 4, 1)]
    params = []
    for (din, dout) in dims:
        key, kw, kb = jax.random.split(key, 3)
        bound = 1.0 / math.sqrt(din)
        w = jax.random.uniform(kw, (din, dout), jnp.float32, -bound, bound)
        b = jax.random.uniform(kb, (dout,), jnp.float32, -bound, bound)
        params.append((w.astype(jnp.bfloat16), b))
    return params


def _round_up(x, m):
    return ((x + m - 1) // m) * m


def critic_forward(x, params, *, block_b=256):
    """Calls the fused Pallas critic kernel.  x: (batch, data_dim) f32."""
    (w1, b1), (w2, b2), (w3, b3), (w4, b4) = params
    B, data_dim = x.shape
    H = w1.shape[1]

    # Batch tile: >= 128 rows when the batch allows it, padded to a multiple.
    tb = min(block_b, _round_up(B, 8))
    b_pad = _round_up(B, tb)
    n_tiles = pl.cdiv(b_pad, tb)

    # Pad feature dim to a lane-friendly multiple of 128 (zero pad == same math).
    k_pad = max(128, _round_up(data_dim, 128))

    x_p = jnp.pad(x.astype(jnp.bfloat16),
                  ((0, b_pad - B), (0, k_pad - data_dim)))
    w1_p = jnp.pad(w1.astype(jnp.bfloat16), ((0, k_pad - data_dim), (0, 0)))
    w2_p = w2.astype(jnp.bfloat16)
    w3_p = w3.astype(jnp.bfloat16)
    w4_row = w4.reshape(1, -1).astype(jnp.bfloat16)        # (1, 4H)

    b1_r = b1.reshape(1, -1).astype(jnp.float32)
    b2_r = b2.reshape(1, -1).astype(jnp.float32)
    b3_r = b3.reshape(1, -1).astype(jnp.float32)
    b4_r = b4.reshape(1, -1).astype(jnp.float32)           # (1, 1)

    # Weights/biases use constant index maps -> fetched once, VMEM-resident.
    in_specs = [
        pl.BlockSpec((tb, k_pad), lambda i: (i, 0)),       # x tile (pipelined)
        pl.BlockSpec((k_pad, H), lambda i: (0, 0)),        # W1
        pl.BlockSpec((1, H), lambda i: (0, 0)),            # b1
        pl.BlockSpec((H, 2 * H), lambda i: (0, 0)),        # W2
        pl.BlockSpec((1, 2 * H), lambda i: (0, 0)),        # b2
        pl.BlockSpec((2 * H, 4 * H), lambda i: (0, 0)),    # W3
        pl.BlockSpec((1, 4 * H), lambda i: (0, 0)),        # b3
        pl.BlockSpec((1, 4 * H), lambda i: (0, 0)),        # W4 (as a row)
        pl.BlockSpec((1, 1), lambda i: (0, 0)),            # b4
    ]

    out = pl.pallas_call(
        critic_kernel,
        grid=(n_tiles,),
        in_specs=in_specs,
        out_specs=pl.BlockSpec((tb, 1), lambda i: (i, 0)),
        out_shape=jax.ShapeDtypeStruct((b_pad, 1), jnp.float32),
        compiler_params=pltpu.CompilerParams(
            dimension_semantics=("parallel",)),             # v7x: 2 TCs share tiles
    )(x_p, w1_p, b1_r, w2_p, b2_r, w3_p, b3_r, w4_row, b4_r)

    return out[:B]


def critic_reference(x, params):
    """Pure-JAX reference mirroring the kernel's bf16-in / f32-accumulate math."""
    h = x.astype(jnp.float32)
    n = len(params)
    for i, (w, b) in enumerate(params):
        if i < n - 1:
            h = jnp.dot(h.astype(jnp.bfloat16), w.astype(jnp.bfloat16),
                        preferred_element_type=jnp.float32) + b.astype(jnp.float32)
            h = jnp.where(h > 0, h, NEG_SLOPE * h)
        else:
            w_row = w.reshape(1, -1).astype(jnp.float32)
            h = jnp.sum(h * w_row, axis=-1, keepdims=True) + b.astype(jnp.float32)
    return h


if __name__ == "__main__":
    key = jax.random.PRNGKey(0)
    k_params, k_x = jax.random.split(key)

    # Small but tiling-exercising shapes (batch not a multiple of the tile).
    batch, data_dim, hidden_dim = 500, 50, 64

    params = init_critic_params(k_params, data_dim=data_dim, hidden_dim=hidden_dim)
    x = jax.random.normal(k_x, (batch, data_dim), jnp.float32)

    out = critic_forward(x, params, block_b=256)
    out = jax.block_until_ready(out)

    ref = critic_reference(x, params)
    assert out.shape == (batch, 1), out.shape
    max_err = jnp.max(jnp.abs(out - ref))
    assert jnp.allclose(out, ref, atol=2e-3, rtol=2e-3), f"max abs err {max_err}"

    print("KERNEL_OK")
</pallas_src>

<mosaic_0001>
module attributes {stable_mosaic.version = 11 : i64} {
  func.func @critic_kernel(%arg0: i32, %arg1: memref<256x128xbf16, #tpu.memory_space<vmem>>, %arg2: memref<128x64xbf16, #tpu.memory_space<vmem>>, %arg3: memref<1x64xf32, #tpu.memory_space<vmem>>, %arg4: memref<64x128xbf16, #tpu.memory_space<vmem>>, %arg5: memref<1x128xf32, #tpu.memory_space<vmem>>, %arg6: memref<128x256xbf16, #tpu.memory_space<vmem>>, %arg7: memref<1x256xf32, #tpu.memory_space<vmem>>, %arg8: memref<1x256xbf16, #tpu.memory_space<vmem>>, %arg9: memref<1x1xf32, #tpu.memory_space<vmem>>, %arg10: memref<256x1xf32, #tpu.memory_space<vmem>>) attributes {dimension_semantics = [#tpu.dimension_semantics<parallel>], iteration_bounds = array<i64: 2>, scalar_prefetch = 0 : i64, scratch_operands = 0 : i64, tpu.core_type = #tpu.core_type<tc>, window_params = [{transform_indices = @transform_0, window_bounds = array<i64: 256, 128>}, {pipeline_mode = #tpu.pipeline_mode<synchronous>, transform_indices = @transform_1, window_bounds = array<i64: 128, 64>}, {pipeline_mode = #tpu.pipeline_mode<synchronous>, transform_indices = @transform_2, window_bounds = array<i64: 1, 64>}, {pipeline_mode = #tpu.pipeline_mode<synchronous>, transform_indices = @transform_3, window_bounds = array<i64: 64, 128>}, {pipeline_mode = #tpu.pipeline_mode<synchronous>, transform_indices = @transform_4, window_bounds = array<i64: 1, 128>}, {pipeline_mode = #tpu.pipeline_mode<synchronous>, transform_indices = @transform_5, window_bounds = array<i64: 128, 256>}, {pipeline_mode = #tpu.pipeline_mode<synchronous>, transform_indices = @transform_6, window_bounds = array<i64: 1, 256>}, {pipeline_mode = #tpu.pipeline_mode<synchronous>, transform_indices = @transform_7, window_bounds = array<i64: 1, 256>}, {pipeline_mode = #tpu.pipeline_mode<synchronous>, transform_indices = @transform_8, window_bounds = array<i64: 1, 1>}, {transform_indices = @transform_9, window_bounds = array<i64: 256, 1>}]} {
    %c0 = arith.constant 0 : index
    %c0_0 = arith.constant 0 : index
    %0 = vector.load %arg1[%c0, %c0_0] : memref<256x128xbf16, #tpu.memory_space<vmem>>, vector<256x128xbf16>
    %c0_1 = arith.constant 0 : index
    %c0_2 = arith.constant 0 : index
    %1 = vector.load %arg2[%c0_1, %c0_2] : memref<128x64xbf16, #tpu.memory_space<vmem>>, vector<128x64xbf16>
    %cst = arith.constant dense<0.000000e+00> : vector<256x64xf32>
    %2 = tpu.matmul %0, %1, %cst {dimension_numbers = #tpu.dot_dimension_numbers<[1], [0], [0], [1], [0, 0, 1, 1], [], []>} : vector<256x128xbf16>, vector<128x64xbf16>, vector<256x64xf32> -> vector<256x64xf32>
    %c0_3 = arith.constant 0 : index
    %c0_4 = arith.constant 0 : index
    %3 = vector.load %arg3[%c0_3, %c0_4] : memref<1x64xf32, #tpu.memory_space<vmem>>, vector<1x64xf32>
    %4 = vector.broadcast %3 : vector<1x64xf32> to vector<256x64xf32>
    %5 = arith.addf %2, %4 : vector<256x64xf32>
    %cst_5 = arith.constant 0.000000e+00 : f32
    %6 = vector.broadcast %cst_5 : f32 to vector<256x64xf32>
    %7 = arith.cmpf ogt, %5, %6 : vector<256x64xf32>
    %cst_6 = arith.constant 2.000000e-01 : f32
    %8 = vector.broadcast %cst_6 : f32 to vector<256x64xf32>
    %9 = arith.mulf %8, %5 : vector<256x64xf32>
    %10 = arith.select %7, %5, %9 : vector<256x64xi1>, vector<256x64xf32>
    %11 = arith.truncf %10 : vector<256x64xf32> to vector<256x64xbf16>
    %c0_7 = arith.constant 0 : index
    %c0_8 = arith.constant 0 : index
    %12 = vector.load %arg4[%c0_7, %c0_8] : memref<64x128xbf16, #tpu.memory_space<vmem>>, vector<64x128xbf16>
    %cst_9 = arith.constant dense<0.000000e+00> : vector<256x128xf32>
    %13 = tpu.matmul %11, %12, %cst_9 {dimension_numbers = #tpu.dot_dimension_numbers<[1], [0], [0], [1], [0, 0, 1, 1], [], []>} : vector<256x64xbf16>, vector<64x128xbf16>, vector<256x128xf32> -> vector<256x128xf32>
    %c0_10 = arith.constant 0 : index
    %c0_11 = arith.constant 0 : index
    %14 = vector.load %arg5[%c0_10, %c0_11] : memref<1x128xf32, #tpu.memory_space<vmem>>, vector<1x128xf32>
    %15 = vector.broadcast %14 : vector<1x128xf32> to vector<256x128xf32>
    %16 = arith.addf %13, %15 : vector<256x128xf32>
    %cst_12 = arith.constant 0.000000e+00 : f32
    %17 = vector.broadcast %cst_12 : f32 to vector<256x128xf32>
    %18 = arith.cmpf ogt, %16, %17 : vector<256x128xf32>
    %cst_13 = arith.constant 2.000000e-01 : f32
    %19 = vector.broadcast %cst_13 : f32 to vector<256x128xf32>
    %20 = arith.mulf %19, %16 : vector<256x128xf32>
    %21 = arith.select %18, %16, %20 : vector<256x128xi1>, vector<256x128xf32>
    %22 = arith.truncf %21 : vector<256x128xf32> to vector<256x128xbf16>
    %c0_14 = arith.constant 0 : index
    %c0_15 = arith.constant 0 : index
    %23 = vector.load %arg6[%c0_14, %c0_15] : memref<128x256xbf16, #tpu.memory_space<vmem>>, vector<128x256xbf16>
    %cst_16 = arith.constant dense<0.000000e+00> : vector<256x256xf32>
    %24 = tpu.matmul %22, %23, %cst_16 {dimension_numbers = #tpu.dot_dimension_numbers<[1], [0], [0], [1], [0, 0, 1, 1], [], []>} : vector<256x128xbf16>, vector<128x256xbf16>, vector<256x256xf32> -> vector<256x256xf32>
    %c0_17 = arith.constant 0 : index
    %c0_18 = arith.constant 0 : index
    %25 = vector.load %arg7[%c0_17, %c0_18] : memref<1x256xf32, #tpu.memory_space<vmem>>, vector<1x256xf32>
    %26 = vector.broadcast %25 : vector<1x256xf32> to vector<256x256xf32>
    %27 = arith.addf %24, %26 : vector<256x256xf32>
    %cst_19 = arith.constant 0.000000e+00 : f32
    %28 = vector.broadcast %cst_19 : f32 to vector<256x256xf32>
    %29 = arith.cmpf ogt, %27, %28 : vector<256x256xf32>
    %cst_20 = arith.constant 2.000000e-01 : f32
    %30 = vector.broadcast %cst_20 : f32 to vector<256x256xf32>
    %31 = arith.mulf %30, %27 : vector<256x256xf32>
    %32 = arith.select %29, %27, %31 : vector<256x256xi1>, vector<256x256xf32>
    %c0_21 = arith.constant 0 : index
    %c0_22 = arith.constant 0 : index
    %33 = vector.load %arg8[%c0_21, %c0_22] : memref<1x256xbf16, #tpu.memory_space<vmem>>, vector<1x256xbf16>
    %34 = arith.extf %33 : vector<1x256xbf16> to vector<1x256xf32>
    %35 = vector.broadcast %34 : vector<1x256xf32> to vector<256x256xf32>
    %36 = arith.mulf %32, %35 : vector<256x256xf32>
    %cst_23 = arith.constant dense<0.000000e+00> : vector<256xf32>
    %37 = vector.multi_reduction <add>, %36, %cst_23 [1] : vector<256x256xf32> to vector<256xf32>
    %38 = vector.shape_cast %37 : vector<256xf32> to vector<256x1xf32>
    %c0_24 = arith.constant 0 : index
    %c0_25 = arith.constant 0 : index
    %39 = vector.load %arg9[%c0_24, %c0_25] : memref<1x1xf32, #tpu.memory_space<vmem>>, vector<1x1xf32>
    %40 = vector.broadcast %39 : vector<1x1xf32> to vector<256x1xf32>
    %41 = arith.addf %38, %40 : vector<256x1xf32>
    %c0_26 = arith.constant 0 : index
    %c0_27 = arith.constant 0 : index
    %42 = vector.load %arg10[%c0_26, %c0_27] : memref<256x1xf32, #tpu.memory_space<vmem>>, vector<256x1xf32>
    tpu.vector_store %arg10[%c0_26, %c0_27], %41 {strides = array<i32>} : memref<256x1xf32, #tpu.memory_space<vmem>>, vector<256x1xf32>,
    return
  }
  func.func @transform_0(%arg0: i32) -> (i32, i32) {
    %c0_i32 = arith.constant 0 : i32
    %c0_i32_0 = arith.constant 0 : i32
    return %arg0, %c0_i32 : i32, i32
  }
  func.func @transform_1(%arg0: i32) -> (i32, i32) {
    %c0_i32 = arith.constant 0 : i32
    %c0_i32_0 = arith.constant 0 : i32
    %c0_i32_1 = arith.constant 0 : i32
    return %c0_i32, %c0_i32_0 : i32, i32
  }
  func.func @transform_2(%arg0: i32) -> (i32, i32) {
    %c0_i32 = arith.constant 0 : i32
    %c0_i32_0 = arith.constant 0 : i32
    %c0_i32_1 = arith.constant 0 : i32
    return %c0_i32, %c0_i32_0 : i32, i32
  }
  func.func @transform_3(%arg0: i32) -> (i32, i32) {
    %c0_i32 = arith.constant 0 : i32
    %c0_i32_0 = arith.constant 0 : i32
    %c0_i32_1 = arith.constant 0 : i32
    return %c0_i32, %c0_i32_0 : i32, i32
  }
  func.func @transform_4(%arg0: i32) -> (i32, i32) {
    %c0_i32 = arith.constant 0 : i32
    %c0_i32_0 = arith.constant 0 : i32
    %c0_i32_1 = arith.constant 0 : i32
    return %c0_i32, %c0_i32_0 : i32, i32
  }
  func.func @transform_5(%arg0: i32) -> (i32, i32) {
    %c0_i32 = arith.constant 0 : i32
    %c0_i32_0 = arith.constant 0 : i32
    %c0_i32_1 = arith.constant 0 : i32
    return %c0_i32, %c0_i32_0 : i32, i32
  }
  func.func @transform_6(%arg0: i32) -> (i32, i32) {
    %c0_i32 = arith.constant 0 : i32
    %c0_i32_0 = arith.constant 0 : i32
    %c0_i32_1 = arith.constant 0 : i32
    return %c0_i32, %c0_i32_0 : i32, i32
  }
  func.func @transform_7(%arg0: i32) -> (i32, i32) {
    %c0_i32 = arith.constant 0 : i32
    %c0_i32_0 = arith.constant 0 : i32
    %c0_i32_1 = arith.constant 0 : i32
    return %c0_i32, %c0_i32_0 : i32, i32
  }
  func.func @transform_8(%arg0: i32) -> (i32, i32) {
    %c0_i32 = arith.constant 0 : i32
    %c0_i32_0 = arith.constant 0 : i32
    %c0_i32_1 = arith.constant 0 : i32
    return %c0_i32, %c0_i32_0 : i32, i32
  }
  func.func @transform_9(%arg0: i32) -> (i32, i32) {
    %c0_i32 = arith.constant 0 : i32
    %c0_i32_0 = arith.constant 0 : i32
    return %arg0, %c0_i32 : i32, i32
  }
}

</mosaic_0001>

<bundles_post_ra>
// kernel: tpu_custom_call.1
= control target key start
LH: loop header
LB: loop body
LE: loop exit
PB: predicated region body
PF: predicated region fallthrough
CT: control target
= control target key end

     0   :  { %s3307_s0 = inlined_call_operand.hbm [shape: bf16[512,128], index: 0, kind: input, shape index: {}]   ;;  %s3308_s1 = inlined_call_operand.vmem [shape: bf16[128,64], index: 1, kind: input, shape index: {}]   ;;  %s3309_s2 = inlined_call_operand.vmem [shape: f32[1,64], index: 2, kind: input, shape index: {}]   ;;  %s3310_s3 = inlined_call_operand.vmem [shape: bf16[64,128], index: 3, kind: input, shape index: {}]   ;;  %s3311_s4 = inlined_call_operand.vmem [shape: f32[1,128], index: 4, kind: input, shape index: {}]   ;;  %s3312_s5 = inlined_call_operand.hbm [shape: bf16[128,256], index: 5, kind: input, shape index: {}]   ;;  %s3313_s6 = inlined_call_operand.vmem [shape: f32[1,256], index: 6, kind: input, shape index: {}]   ;;  %s3314_s7 = inlined_call_operand.vmem [shape: bf16[1,256], index: 7, kind: input, shape index: {}]   ;;  %s3315_s8 = inlined_call_operand.<no memory space> [shape: f32[1,1], index: 8, kind: input, shape index: {}]   ;;  %s3316_s9 = inlined_call_operand.vmem [shape: f32[512,1], index: 9, kind: output, shape index: {}]  }
   0x1   :  { %v14_v0 = vstv %s3315_s8 }
   0x2   :  { %15 = vst [vmem:[#allocation2] sm:$0x1] %v14_v0 }
   0x3   :  { %16 = vsyncpa [#allocation4], 0 }
   0x4   :  { %18 = vsyncpa [#allocation4 + $0x1], 0 }
   0x5   :  { %19 = vsyncpa [#allocation6], 0  ;;  %s2517_s11 = smov 0   ;;  %s2519_s12 = smov 0  }
   0x6   :  { %s2521_s13 = smov 0   ;;  %s2523_s14 = smov 0  }
   0x7 LB: > { %s3317_s8 = sadd.s32 4294967295, %s2455_s14   ;;  %p45_p0 = scmp.ne.s32.totalorder %s2447_s12, %s2443_s11  ;;  %s2455_s14 = sphi %s2523_s14, %s3334_s14   ;;  %s2451_s13 = sphi %s2521_s13, %s3333_s13   ;;  %s2447_s12 = sphi %s2519_s12, %s3332_s12   ;;  %s2443_s11 = sphi %s2517_s11, %s3331_s11  }
   0x8   : > { %p2539_p1 = scmp.eq.s32.totalorder %s3317_s8, 0  ;;  %p2031_p2 = scmp.ge.s32.totalorder %s2455_s14, 1 }
   0x9   : > { %p250_p3 = scmp.lt.s32.totalorder %s2455_s14, 3  ;;  %s2457_s18 = smov [#allocation5]  }
   0xa   : > { %s3322_s15 = scalar_select %p2539_p1, 1, 0 }
   0xb   : > { %p2547_p4 = por %p2539_p1, %p45_p0  ;;  %p2551_p5 = pnand %p2031_p2, %p250_p3 }
   0xc   : > { %s274_s19 = sshll.u32 %s2457_s18, 4  ;;  %s2564_s21 = sadd.s32 1, %s2455_s14   ;;  %s275_s19 = int_to_ptr.vmem [resolvable:$true] %s274_s19 }
   0xd   : > { %s3323_s16 = scalar_select %p2547_p4, 1, 0 }
   0xe   : > { %s3324_s17 = scalar_select %p2551_p5, 1, 0 }
   0xf   : > { %p2262_p6 = pneg %p2551_p5  ;;  %s32_s22 = sadd.s32 1, %s2451_s13 }
  0x10   : > { %s29_s23 = ssub.s32 %s2455_s14, %s2564_s21  ;;  %s2374_s24 = scalar_lea.vmem %s275_s19, 2048 }
  0x11   : > { %p2559_p7 = pnand %p2262_p6, %p2539_p1  ;;  %p2375_p9 = scmp.ne.s32.totalorder %s275_s19, %s2374_s24 }
  0x12   : > { %p2382_p12 = scmp.lt.s32.totalorder %s275_s19, %s275_s19  ;;  %p2383_p13 = scmp.lt.s32.totalorder %s2374_s24, %s2374_s24 }
  0x13   : > { %p2365_p8 = pneg %p2559_p7 }
  0x14   : > { %p2384_p0 = por %p2383_p13, %p2382_p12 }
  0x15   : > { %p2377_p10 = pnand %p2375_p9, %p2365_p8 }
  0x17   : > { %p2378_p11 = pneg %p2377_p10 }
  0x19   : > { %p2385_p2 = pnand %p2384_p0, %p2378_p11 }
  0x1b   : > { %2388 = shalt.err (!%p2385_p2)
}
  0x1c   : > { %s2458_s25 = smov 128   ;;  %s2459_s26 = smov 8  }
  0x1d   : > { %2265 = dma.hbm_to_vmem [thread:$0]  (!%p2559_p7), %s3312_s5, 2048, %s275_s19, [#allocation6], %s2458_s25, %s2458_s25, %s2459_s26  }
  0x1e   : > { %p30_p3 = scmp.eq.s32.totalorder %s29_s23, 0  ;;  %p39_p6 = scmp.ne.s32.totalorder %s2451_s13, %s2447_s12 }
  0x1f   : > { %p40_p8 = scmp.eq.s32.totalorder %s2455_s14, 0  ;;  %p2271_p9 = scmp.lt.s32.totalorder %s2455_s14, 2 }
  0x20   : > { %s2581_s29 = scalar_select %p30_p3, %s2451_s13, %s32_s22  }
  0x21   : > { %p41_p10 = por %p40_p8, %p39_p6  ;;  %s297_s30 = sand.u32 1, %s2451_s13  }
  0x22   : > { %s2034_s10 = sshll.u32 %s297_s30, 7  ;;  %s2107_s11 = sshll.u32 %s2455_s14, 11 }
  0x23   : > { %s2588_s8 = scalar_lea.hbm %s3307_s0, %s2107_s11  ;;  %s301_s20 = scalar_lea.vmem [#allocation3], %s2034_s10 }
  0x24   : > { %s308_s19 = sshll.u32 %s301_s20, 4  ;;  %p2592_p7 = pnand %p2271_p9, %p41_p10  ;;  %s2590_s19 = int_to_ptr.vmem [resolvable:$true] %s308_s19 }
  0x25   : > { %s2596_s22 = scalar_lea.sflag [#allocation4], %s297_s30  ;;  %s2389_s25 = scalar_lea.hbm %s2588_s8, 2048 }
  0x26   : > { %p2390_p11 = scmp.ne.s32.totalorder %s2588_s8, %s2389_s25  ;;  %p2391_p12 = pneg %p2592_p7 }
  0x27   : > { %s2394_s28 = scalar_lea.hbm %s3307_s0, 4096  ;;  %p2395_p2 = scmp.lt.s32.totalorder %s2588_s8, %s3307_s0 }
  0x28   : > { %p2392_p13 = pnand %p2391_p12, %p2390_p11  ;;  %p2396_p3 = scmp.lt.s32.totalorder %s2394_s28, %s2389_s25 }
  0x2a   : > { %p2393_p0 = pneg %p2392_p13  ;;  %p2397_p6 = por %p2396_p3, %p2395_p2 }
  0x2c   : > { %p2398_p8 = pnand %p2397_p6, %p2393_p0 }
  0x2e   : > { %2401 = shalt.err (!%p2398_p8)
}
  0x2f   : > { %s2402_s30 = scalar_lea.vmem %s2590_s19, 2048  ;;  %s2460_s18 = smov [#allocation3]  }
  0x30   : > { %p2403_p9 = scmp.ne.s32.totalorder %s2590_s19, %s2402_s30  ;;  %s2407_s24 = sshll.u32 %s2460_s18, 4  ;;  %s2408_s24 = int_to_ptr.vmem [resolvable:$false] %s2407_s24 }
  0x31   : > { %s2409_s20 = scalar_lea.vmem %s2408_s24, 4096  ;;  %p2410_p13 = scmp.lt.s32.totalorder %s2590_s19, %s2408_s24 }
  0x32   : > { %p2405_p10 = pnand %p2403_p9, %p2391_p12  ;;  %p2411_p1 = scmp.lt.s32.totalorder %s2409_s20, %s2402_s30 }
  0x34   : > { %p2406_p11 = pneg %p2405_p10  ;;  %p2412_p4 = por %p2411_p1, %p2410_p13 }
  0x36   : > { %p2413_p5 = pnand %p2412_p4, %p2406_p11 }
  0x38   : > { %2416 = shalt.err (!%p2413_p5)
}
  0x39   : > { %s2461_s25 = smov 64   ;;  %s2462_s26 = smov 4  }
  0x3a   : > { %2269 = dma.hbm_to_vmem [thread:$0]  (!%p2592_p7), %s2588_s8, 2048, %s2590_s19, %s2596_s22, %s2461_s25, %s2461_s25, %s2462_s26  }
  0x3b   : > { %p3327_p12 = scmp.ne.s32.totalorder %s3324_s17, 0 }
  0x3c   : > { %s322_s27 = sand.u32 (!%p3327_p12), 1, %s2447_s12   ;;  %p3328_p1 = scmp.ne.s32.totalorder (!%p3327_p12), %s3323_s16, 0 }
  0x3d   : > { %320 = sbr.rel (%p3327_p12) target bundleno = 953 (0x3b9), region = 56  ;;  %s2038_s28 = sshll.u32 (!%p3327_p12), %s322_s27, 7 }
  0x3e   : > { %s323_s10 = scalar_lea.sflag (!%p3327_p12), [#allocation4], %s322_s27  ;;  %s2620_s11 = scalar_lea.vmem (!%p3327_p12), [#allocation3], %s2038_s28 }
  0x42   : > { %2434 = dma.done.wait (%p3328_p1), %s323_s10, 2048  }
  0x43   : > { %2436 = vsyncadd (%p3328_p1), %s323_s10, 4294965248  ;;  %p3329_p4 = scmp.ne.s32.totalorder %s3322_s15, 0 }
  0x45   : > { %2438 = dma.done.wait (%p3329_p4), [#allocation6], 2048  }
  0x46   : > { %2440 = vsyncadd (%p3329_p4), [#allocation6], 4294965248  ;;  %v2311_v1 = vld [vmem:[%s3308_s1 + $0x38] sm:$0xff]   ;;  %v2312_v2 = vld [vmem:[%s3308_s1 + $0x30] sm:$0xff]   ;;  %vm884_vm4 = vcmask 523264   ;;  %s3330_s10 = sadd.s32 4294967295, %s2455_s14  }
  0x47   : > { %2152 = vmatprep.subr.bf16.mxu0 %v2311_v1  ;;  %v2313_v3 = vld [vmem:[%s3308_s1 + $0x28] sm:$0xff]   ;;  %v2314_v4 = vld [vmem:[%s3308_s1 + $0x20] sm:$0xff]   ;;  %v2315_v6 = vld [vmem:[%s3308_s1 + $0x18] sm:$0xff]   ;;  %s2040_s8 = sshll.u32 %s3330_s10, 5 }
  0x48   : > { %2153 = vmatpush3.bf16.msra.mxu0 %v2311_v1  ;;  %v2319_v5 = vld [vmem:[%s2620_s11] sm:$0xff]   ;;  %v2316_v7 = vld [vmem:[%s3308_s1 + $0x10] sm:$0xff]   ;;  %v2335_v10 = vld [vmem:[%s3310_s3 + $0x18] sm:$0xff]   ;;  %p367_p5 = scmp.lt.s32.totalorder %s2040_s8, 63 }
  0x49   : > { %2154 = vmatprep.subr.bf16.mxu0 %v2312_v2  ;;  %2168 = vmatprep.mubr.bf16.mxu0 %v2319_v5  ;;  %v2317_v8 = vld [vmem:[%s3308_s1 + $0x8] sm:$0xff]   ;;  %v2318_v9 = vld [vmem:[%s3308_s1] sm:$0xff]   ;;  %v2321_v12 = vld [vmem:[%s2620_s11 + $0x10] sm:$0xff]  }
  0x4a   : > { %2200 = vmatprep.subr.bf16.mxu1 %v2335_v10  ;;  %v2320_v11 = vld [vmem:[%s2620_s11 + $0x8] sm:$0xff]   ;;  %v2322_v13 = vld [vmem:[%s2620_s11 + $0x18] sm:$0xff]   ;;  %v2323_v14 = vld [vmem:[%s2620_s11 + $0x20] sm:$0xff]   ;;  %s3336_s8 = smov (!%p367_p5, %s2040_s8), 63 }
  0x4b   : > { %2201 = vmatpush3.bf16.msra.mxu1 %v2335_v10  ;;  %v2324_v15 = vld [vmem:[%s2620_s11 + $0x28] sm:$0xff]   ;;  %v2325_v16 = vld [vmem:[%s2620_s11 + $0x30] sm:$0xff]   ;;  %v2326_v17 = vld [vmem:[%s2620_s11 + $0x38] sm:$0xff]   ;;  %s2041_s17 = sshll.u32 %s3336_s8, 3 }
  0x4c   : > { %2155 = vmatpush3.bf16.msra.mxu0 %v2312_v2  ;;  %v2327_v18 = vld [vmem:[%s2620_s11 + $0x40] sm:$0xff]   ;;  %v2328_v19 = vld [vmem:[%s2620_s11 + $0x48] sm:$0xff]   ;;  %v2329_v20 = vld [vmem:[%s2620_s11 + $0x50] sm:$0xff]   ;;  %s3196_s16 = scalar_lea.vmem %s3316_s9, %s2041_s17 }
  0x4d   : > { %2156 = vmatprep.subr.bf16.mxu0 %v2313_v3  ;;  %v2330_v21 = vld [vmem:[%s2620_s11 + $0x58] sm:$0xff]   ;;  %v2331_v22 = vld [vmem:[%s2620_s11 + $0x60] sm:$0xff]   ;;  %v2332_v23 = vld [vmem:[%s2620_s11 + $0x68] sm:$0xff]  }
  0x4e   : > { %v2333_v24 = vld [vmem:[%s2620_s11 + $0x70] sm:$0xff]   ;;  %v2334_v25 = vld [vmem:[%s2620_s11 + $0x78] sm:$0xff]   ;;  %v2337_v27 = vld [vmem:[%s3310_s3 + $0x8] sm:$0xff]  }
  0x4f   : > { %v2336_v26 = vld [vmem:[%s3310_s3 + $0x10] sm:$0xff]   ;;  %v2338_v28 = vld [vmem:[%s3310_s3] sm:$0xff]  }
  0x50   : > { %2157 = vmatpush3.bf16.msra.mxu0 %v2313_v3  ;;  %2202 = vmatprep.subr.bf16.mxu1 %v2336_v26  ;;  %v2339_v29 = vld [vmem:[#allocation5 + $0x70] ss:$8 sps:$4 sm:$0xff]   ;;  %v2341_v30 = vld [vmem:[#allocation5 + $0x74] ss:$8 sps:$4 sm:$0xff]   ;;  %v2344_v31 = vld [vmem:[#allocation5 + $0x64] ss:$8 sps:$4 sm:$0xff]  }
  0x51   : > { %2158 = vmatprep.subr.bf16.mxu0 %v2314_v4  ;;  %2203 = vmatpush3.bf16.msra.mxu1 %v2336_v26  ;;  %v2682_v32 = vld [vmem:[#allocation5 + $0x60] ss:$8 sps:$4 sm:$0xff]   ;;  %v2684_v33 = vld [vmem:[#allocation5 + $0x54] ss:$8 sps:$4 sm:$0xff]   ;;  %v2687_v34 = vld [vmem:[#allocation5 + $0x50] ss:$8 sps:$4 sm:$0xff]  }
  0x52   : > { %2204 = vmatprep.subr.bf16.mxu1 %v2337_v27  ;;  %v2690_v35 = vld [vmem:[#allocation5 + $0x44] ss:$8 sps:$4 sm:$0xff]   ;;  %v2693_v36 = vld [vmem:[#allocation5 + $0x40] ss:$8 sps:$4 sm:$0xff]   ;;  %v2696_v37 = vld [vmem:[#allocation5 + $0x34] ss:$8 sps:$4 sm:$0xff]  }
  0x53   : > { %v2699_v38 = vld [vmem:[#allocation5 + $0x30] ss:$8 sps:$4 sm:$0xff]   ;;  %v2706_v40 = vld [vmem:[%s3309_s2] ss:$0 sm:$0xff] }
  0x54   : > { %2159 = vmatpush3.bf16.msra.mxu0 %v2314_v4 }
  0x55   : > { %2160 = vmatprep.subr.bf16.mxu0 %v2315_v6  ;;  %2205 = vmatpush3.bf16.msra.mxu1 %v2337_v27 }
  0x56   : > { %2206 = vmatprep.subr.bf16.mxu1 %v2338_v28 }
  0x58   : > { %2161 = vmatpush3.bf16.msra.mxu0 %v2315_v6 }
  0x59   : > { %2162 = vmatprep.subr.bf16.mxu0 %v2316_v7  ;;  %2207 = vmatpush3.bf16.msra.mxu1 %v2338_v28 }
  0x5a   : > { %2240 = vmatprep.subr.bf16.mxu1 %v2341_v30 }
  0x5c   : > { %2163 = vmatpush3.bf16.msra.mxu0 %v2316_v7 }
  0x5d   : > { %2164 = vmatprep.subr.bf16.mxu0 %v2317_v8 }
  0x60   : > { %2165 = vmatpush3.bf16.msra.mxu0 %v2317_v8 }
  0x61   : > { %2166 = vmatprep.subr.bf16.mxu0 %v2318_v9 }
  0x64   : > { %2167 = vmatpush3.bf16.msra.mxu0 %v2318_v9 }
  0x65   : > { %1314 = vmatprep.subr.bf16.mxu0 %v2341_v30 }
  0x67   : > { %2169 = vmatmul.mubr.bf16.vlgmr.msra.gmra.mxu0 %v2320_v11 }
  0x68   : > { %2172 = vmatprep.mubr.bf16.mxu0 %v2321_v12  ;;  %1315 = vmatpush1.bf16.msra.mxu0 %v2339_v29 }
  0x69   : > { %1316 = vmatprep.subr.bf16.mxu0 %v2344_v31 }
  0x6c   : > { %1317 = vmatpush1.bf16.msra.mxu0 %v2682_v32 }
  0x6d   : > { %1318 = vmatprep.subr.bf16.mxu0 %v2684_v33 }
  0x6f   : > { %2173 = vmatmul.mubr.bf16.gmra.mxu0 %v2322_v13 }
  0x70   : > { %2176 = vmatprep.mubr.bf16.mxu0 %v2323_v14  ;;  %1319 = vmatpush1.bf16.msra.mxu0 %v2687_v34 }
  0x71   : > { %1320 = vmatprep.subr.bf16.mxu0 %v2690_v35 }
  0x74   : > { %1321 = vmatpush1.bf16.msra.mxu0 %v2693_v36 }
  0x75   : > { %1322 = vmatprep.subr.bf16.mxu0 %v2696_v37 }
  0x77   : > { %2177 = vmatmul.mubr.bf16.gmra.mxu0 %v2324_v15 }
  0x78   : > { %2180 = vmatprep.mubr.bf16.mxu0 %v2325_v16  ;;  %1323 = vmatpush1.bf16.msra.mxu0 %v2699_v38 }
  0x7f   : > { %2181 = vmatmul.mubr.bf16.gmra.mxu0 %v2326_v17 }
  0x80   : > { %2184 = vmatprep.mubr.bf16.mxu0 %v2327_v18 }
  0x87   : > { %2185 = vmatmul.mubr.bf16.gmra.mxu0 %v2328_v19 }
  0x88   : > { %2188 = vmatprep.mubr.bf16.mxu0 %v2329_v20 }
  0x8f   : > { %2189 = vmatmul.mubr.bf16.gmra.mxu0 %v2330_v21 }
  0x90   : > { %2192 = vmatprep.mubr.bf16.mxu0 %v2331_v22 }
  0x97   : > { %2193 = vmatmul.mubr.bf16.gmra.mxu0 %v2332_v23 }
  0x98   : > { %2196 = vmatprep.mubr.bf16.mxu0 %v2333_v24 }
  0x9f   : > { %2197 = vmatmul.mubr.bf16.gmra.mxu0 %v2334_v25 }
 0x127   : > { %v2170_v39 = vpop.f32.mrf.mxu0 }
 0x128   : > { %v615_v43 = vadd.f32 %v2170_v39, %v2706_v40 }
 0x129   : > { %v606_v41 = vpop.f32.mrf.mxu0 }
 0x12a   : > { %v607_v42 = vadd.f32 %v2706_v40, %v606_v41  ;;  %v767_v50 = vmul.f32 0.2, %v615_v43  ;;  %vm735_vm2 = vcmp.gt.f32.partialorder %v615_v43, 0.0 }
 0x12b   : > { %v2171_v44 = vpop.f32.mrf.mxu0 }
 0x12c   : > { %v618_v45 = vadd.f32 %v2171_v44, %v2706_v40  ;;  %v765_v47 = vmul.f32 0.2, %v607_v42  ;;  %vm733_vm1 = vcmp.gt.f32.partialorder %v607_v42, 0.0  ;;  %v799_v58 = vsel %vm735_vm2, %v615_v43, %v767_v50 }
 0x12d   : > { %v609_v46 = vpop.f32.mrf.mxu0 }
 0x12e   : > { %vm736_vm0 = vcmp.gt.f32.partialorder %v618_v45, 0.0  ;;  %v768_v48 = vmul.f32 0.2, %v618_v45  ;;  %v610_v49 = vadd.f32 %v2706_v40, %v609_v46  ;;  %v797_v56 = vsel %vm733_vm1, %v607_v42, %v765_v47 }
 0x12f   : > { %v2174_v51 = vpop.f32.mrf.mxu0 }
 0x130   : > { %v766_v52 = vmul.f32 0.2, %v610_v49  ;;  %vm734_vm3 = vcmp.gt.f32.partialorder %v610_v49, 0.0  ;;  %v800_v53 = vsel %vm736_vm0, %v618_v45, %v768_v48  ;;  %v631_v59 = vadd.f32 %v2174_v51, %v2706_v40 }
 0x131   : > { %v622_v54 = vpop.f32.mrf.mxu0  ;;  %v830_v62 = vpack.c.bf16 %v800_v53, %v799_v58 }
 0x132   : > { %v623_v55 = vadd.f32 %v2706_v40, %v622_v54  ;;  %v798_v57 = vsel %vm734_vm3, %v610_v49, %v766_v52  ;;  %v771_v4 = vmul.f32 0.2, %v631_v59  ;;  %vm739_vm7 = vcmp.gt.f32.partialorder %v631_v59, 0.0 }
 0x133   : > { %v2175_v60 = vpop.f32.mrf.mxu0  ;;  %v829_v61 = vpack.c.bf16 %v798_v57, %v797_v56 }
 0x134   : > { %v634_v63 = vadd.f32 %v2175_v60, %v2706_v40  ;;  %v769_v1 = vmul.f32 0.2, %v623_v55  ;;  %vm737_vm6 = vcmp.gt.f32.partialorder %v623_v55, 0.0  ;;  %v803_v12 = vsel %vm739_vm7, %v631_v59, %v771_v4 }
 0x135   : > { %v625_v0 = vpop.f32.mrf.mxu0  ;;  %2208 = vmatprep.mubr.msk.bf16.mxu1 %vm884_vm4, %v829_v61 }
 0x136   : > { %vm740_vm5 = vcmp.gt.f32.partialorder %v634_v63, 0.0  ;;  %v772_v2 = vmul.f32 0.2, %v634_v63  ;;  %v626_v3 = vadd.f32 %v2706_v40, %v625_v0  ;;  %2209 = vmatmul.mubr.msk.bf16.vlgmr.msra.gmra.mxu1 %vm884_vm4, %v830_v62  ;;  %v801_v9 = vsel %vm737_vm6, %v623_v55, %v769_v1 }
 0x137   : > { %v2178_v5 = vpop.f32.mrf.mxu0  ;;  %2248 = vmatpush1.bf16.msra.mxu1 %v2339_v29 }
 0x138   : > { %vm738_vm8 = vcmp.gt.f32.partialorder %v626_v3, 0.0  ;;  %v770_v6 = vmul.f32 0.2, %v626_v3  ;;  %2241 = vmatprep.subr.bf16.mxu1 %v2344_v31  ;;  %v804_v7 = vsel %vm740_vm5, %v634_v63, %v772_v2  ;;  %v647_v14 = vadd.f32 %v2178_v5, %v2706_v40 }
 0x139   : > { %v638_v8 = vpop.f32.mrf.mxu0  ;;  %v832_v16 = vpack.c.bf16 %v804_v7, %v803_v12 }
 0x13a   : > { %v802_v10 = vsel %vm738_vm8, %v626_v3, %v770_v6  ;;  %v639_v11 = vadd.f32 %v2706_v40, %v638_v8  ;;  %v775_v22 = vmul.f32 0.2, %v647_v14  ;;  %vm743_vm11 = vcmp.gt.f32.partialorder %v647_v14, 0.0 }
 0x13b   : > { %v831_v13 = vpack.c.bf16 %v802_v10, %v801_v9  ;;  %v2179_v15 = vpop.f32.mrf.mxu0  ;;  %2249 = vmatpush1.bf16.msra.mxu1 %v2682_v32 }
 0x13c   : > { %v650_v17 = vadd.f32 %v2179_v15, %v2706_v40  ;;  %2242 = vmatprep.subr.bf16.mxu1 %v2684_v33  ;;  %v773_v19 = vmul.f32 0.2, %v639_v11  ;;  %vm741_vm10 = vcmp.gt.f32.partialorder %v639_v11, 0.0  ;;  %v807_v30 = vsel %vm743_vm11, %v647_v14, %v775_v22 }
 0x13d   : > { %v641_v18 = vpop.f32.mrf.mxu0  ;;  %2212 = vmatprep.mubr.msk.bf16.mxu1 %vm884_vm4, %v831_v13 }
 0x13e   : > { %vm744_vm9 = vcmp.gt.f32.partialorder %v650_v17, 0.0  ;;  %v776_v20 = vmul.f32 0.2, %v650_v17  ;;  %v642_v21 = vadd.f32 %v2706_v40, %v641_v18  ;;  %2213 = vmatmul.mubr.msk.bf16.gmra.mxu1 %vm884_vm4, %v832_v16  ;;  %v805_v27 = vsel %vm741_vm10, %v639_v11, %v773_v19 }
 0x13f   : > { %v2182_v23 = vpop.f32.mrf.mxu0  ;;  %2250 = vmatpush1.bf16.msra.mxu1 %v2687_v34 }
 0x140   : > { %vm742_vm12 = vcmp.gt.f32.partialorder %v642_v21, 0.0  ;;  %v774_v24 = vmul.f32 0.2, %v642_v21  ;;  %2243 = vmatprep.subr.bf16.mxu1 %v2690_v35  ;;  %v808_v25 = vsel %vm744_vm9, %v650_v17, %v776_v20  ;;  %v663_v32 = vadd.f32 %v2182_v23, %v2706_v40 }
 0x141   : > { %v654_v26 = vpop.f32.mrf.mxu0  ;;  %v834_v39 = vpack.c.bf16 %v808_v25, %v807_v30 }
 0x142   : > { %v806_v28 = vsel %vm742_vm12, %v642_v21, %v774_v24  ;;  %v655_v29 = vadd.f32 %v2706_v40, %v654_v26  ;;  %v779_v44 = vmul.f32 0.2, %v663_v32  ;;  %vm747_vm15 = vcmp.gt.f32.partialorder %v663_v32, 0.0 }
 0x143   : > { %v833_v31 = vpack.c.bf16 %v806_v28, %v805_v27  ;;  %v2183_v33 = vpop.f32.mrf.mxu0  ;;  %2251 = vmatpush1.bf16.msra.mxu1 %v2693_v36 }
 0x144   : > { %v666_v34 = vadd.f32 %v2183_v33, %v2706_v40  ;;  %2244 = vmatprep.subr.bf16.mxu1 %v2696_v37  ;;  %v777_v35 = vmul.f32 0.2, %v655_v29  ;;  %vm745_vm14 = vcmp.gt.f32.partialorder %v655_v29, 0.0  ;;  %v811_v51 = vsel %vm747_vm15, %v663_v32, %v779_v44 }
 0x145   : > { %v657_v41 = vpop.f32.mrf.mxu0  ;;  %2216 = vmatprep.mubr.msk.bf16.mxu1 %vm884_vm4, %v833_v31 }
 0x146   : > { %vm748_vm13 = vcmp.gt.f32.partialorder %v666_v34, 0.0  ;;  %v780_v42 = vmul.f32 0.2, %v666_v34  ;;  %v658_v43 = vadd.f32 %v2706_v40, %v657_v41  ;;  %2217 = vmatmul.mubr.msk.bf16.gmra.mxu1 %vm884_vm4, %v834_v39  ;;  %v809_v48 = vsel %vm745_vm14, %v655_v29, %v777_v35 }
 0x147   : > { %v2186_v45 = vpop.f32.mrf.mxu0  ;;  %2252 = vmatpush1.bf16.msra.mxu1 %v2699_v38 }
 0x148   : > { %vm746_vm0 = vcmp.gt.f32.partialorder %v658_v43, 0.0  ;;  %v778_v36 = vmul.f32 0.2, %v658_v43  ;;  %v812_v46 = vsel %vm748_vm13, %v666_v34, %v780_v42  ;;  %v679_v37 = vadd.f32 %v2186_v45, %v2706_v40 }
 0x149   : > { %v670_v47 = vpop.f32.mrf.mxu0  ;;  %v836_v54 = vpack.c.bf16 %v812_v46, %v811_v51 }
 0x14a   : > { %v810_v49 = vsel %vm746_vm0, %v658_v43, %v778_v36  ;;  %v671_v50 = vadd.f32 %v2706_v40, %v670_v47  ;;  %v783_v56 = vmul.f32 0.2, %v679_v37  ;;  %vm751_vm2 = vcmp.gt.f32.partialorder %v679_v37, 0.0 }
 0x14b   : > { %v835_v52 = vpack.c.bf16 %v810_v49, %v809_v48  ;;  %v2187_v53 = vpop.f32.mrf.mxu0 }
 0x14c   : > { %v682_v55 = vadd.f32 %v2187_v53, %v2706_v40  ;;  %v781_v38 = vmul.f32 0.2, %v671_v50  ;;  %vm749_vm3 = vcmp.gt.f32.partialorder %v671_v50, 0.0  ;;  %v815_v1 = vsel %vm751_vm2, %v679_v37, %v783_v56 }
 0x14d   : > { %v673_v57 = vpop.f32.mrf.mxu0  ;;  %2220 = vmatprep.mubr.msk.bf16.mxu1 %vm884_vm4, %v835_v52 }
 0x14e   : > { %vm752_vm1 = vcmp.gt.f32.partialorder %v682_v55, 0.0  ;;  %v784_v58 = vmul.f32 0.2, %v682_v55  ;;  %v674_v59 = vadd.f32 %v2706_v40, %v673_v57  ;;  %2221 = vmatmul.mubr.msk.bf16.gmra.mxu1 %vm884_vm4, %v836_v54  ;;  %v813_v2 = vsel %vm749_vm3, %v671_v50, %v781_v38 }
 0x14f   : > { %v2190_v60 = vpop.f32.mrf.mxu0 }
 0x150   : > { %v816_v61 = vsel %vm752_vm1, %v682_v55, %v784_v58  ;;  %vm750_vm5 = vcmp.gt.f32.partialorder %v674_v59, 0.0  ;;  %v782_v62 = vmul.f32 0.2, %v674_v59  ;;  %v695_v63 = vadd.f32 %v2190_v60, %v2706_v40  ;;  %v2356_v58 = vld [vmem:[#allocation5 + $0x24] ss:$8 sps:$4 sm:$0xff]  }
 0x151   : > { %v686_v0 = vpop.f32.mrf.mxu0  ;;  %v838_v5 = vpack.c.bf16 %v816_v61, %v815_v1  ;;  %1324 = vmatprep.subr.bf16.mxu0 %v2356_v58  ;;  %2245 = vmatprep.subr.bf16.mxu1 %v2356_v58  ;;  %v2359_v60 = vld [vmem:[#allocation5 + $0x14] ss:$8 sps:$4 sm:$0xff]   ;;  %v2362_v61 = vld [vmem:[#allocation5 + $0x4] ss:$8 sps:$4 sm:$0xff]  }
 0x152   : > { %v814_v3 = vsel %vm750_vm5, %v674_v59, %v782_v62  ;;  %v687_v4 = vadd.f32 %v2706_v40, %v686_v0  ;;  %v787_v7 = vmul.f32 0.2, %v695_v63  ;;  %vm755_vm6 = vcmp.gt.f32.partialorder %v695_v63, 0.0  ;;  %v2354_v59 = vld [vmem:[#allocation5 + $0x20] ss:$8 sps:$4 sm:$0xff]  }
 0x153   : > { %v837_v6 = vpack.c.bf16 %v814_v3, %v813_v2  ;;  %v2191_v8 = vpop.f32.mrf.mxu0  ;;  %1325 = vmatpush1.bf16.msra.mxu0 %v2354_v59  ;;  %2253 = vmatpush1.bf16.msra.mxu1 %v2354_v59  ;;  %v2360_v62 = vld [vmem:[#allocation5] ss:$8 sps:$4 sm:$0xff]   ;;  %v2768_v1 = vld [vmem:[%s3311_s4] ss:$0 sm:$0xff] }
 0x154   : > { %vm753_vm7 = vcmp.gt.f32.partialorder %v687_v4, 0.0  ;;  %v785_v9 = vmul.f32 0.2, %v687_v4  ;;  %v698_v10 = vadd.f32 %v2191_v8, %v2706_v40  ;;  %v819_v14 = vsel %vm755_vm6, %v695_v63, %v787_v7  ;;  %1326 = vmatprep.subr.bf16.mxu0 %v2359_v60  ;;  %2246 = vmatprep.subr.bf16.mxu1 %v2359_v60 }
 0x155   : > { %v689_v11 = vpop.f32.mrf.mxu0  ;;  %2224 = vmatprep.mubr.msk.bf16.mxu1 %vm884_vm4, %v837_v6  ;;  %v2463_v63 = vmov 0  }
 0x156   : > { %vm756_vm8 = vcmp.gt.f32.partialorder %v698_v10, 0.0  ;;  %v788_v12 = vmul.f32 0.2, %v698_v10  ;;  %v690_v13 = vadd.f32 %v2706_v40, %v689_v11  ;;  %2225 = vmatmul.mubr.msk.bf16.gmra.mxu1 %vm884_vm4, %v838_v5  ;;  %v817_v15 = vsel %vm753_vm7, %v687_v4, %v785_v9  ;;  %1346 = vmatprep.mubr.bf16.mxu0 %v2463_v63 }
 0x157   : > { %v2194_v16 = vpop.f32.mrf.mxu0 }
 0x158   : > { %v820_v17 = vsel %vm756_vm8, %v698_v10, %v788_v12  ;;  %vm754_vm9 = vcmp.gt.f32.partialorder %v690_v13, 0.0  ;;  %v786_v18 = vmul.f32 0.2, %v690_v13  ;;  %v711_v19 = vadd.f32 %v2194_v16, %v2706_v40 }
 0x159   : > { %v702_v20 = vpop.f32.mrf.mxu0  ;;  %v840_v21 = vpack.c.bf16 %v820_v17, %v819_v14 }
 0x15a   : > { %v818_v22 = vsel %vm754_vm9, %v690_v13, %v786_v18  ;;  %v703_v23 = vadd.f32 %v2706_v40, %v702_v20  ;;  %v791_v25 = vmul.f32 0.2, %v711_v19  ;;  %vm759_vm10 = vcmp.gt.f32.partialorder %v711_v19, 0.0 }
 0x15b   : > { %v839_v24 = vpack.c.bf16 %v818_v22, %v817_v15  ;;  %v2195_v26 = vpop.f32.mrf.mxu0 }
 0x15c   : > { %vm757_vm11 = vcmp.gt.f32.partialorder %v703_v23, 0.0  ;;  %v789_v27 = vmul.f32 0.2, %v703_v23  ;;  %v714_v28 = vadd.f32 %v2195_v26, %v2706_v40  ;;  %v823_v32 = vsel %vm759_vm10, %v711_v19, %v791_v25 }
 0x15d   : > { %v705_v29 = vpop.f32.mrf.mxu0  ;;  %2228 = vmatprep.mubr.msk.bf16.mxu1 %vm884_vm4, %v839_v24 }
 0x15e   : > { %vm760_vm12 = vcmp.gt.f32.partialorder %v714_v28, 0.0  ;;  %v792_v30 = vmul.f32 0.2, %v714_v28  ;;  %v706_v31 = vadd.f32 %v2706_v40, %v705_v29  ;;  %2229 = vmatmul.mubr.msk.bf16.gmra.mxu1 %vm884_vm4, %v840_v21  ;;  %v821_v33 = vsel %vm757_vm11, %v703_v23, %v789_v27 }
 0x15f   : > { %v2198_v39 = vpop.f32.mrf.mxu0 }
 0x160   : > { %v824_v34 = vsel %vm760_vm12, %v714_v28, %v792_v30  ;;  %vm758_vm13 = vcmp.gt.f32.partialorder %v706_v31, 0.0  ;;  %v790_v41 = vmul.f32 0.2, %v706_v31  ;;  %v727_v35 = vadd.f32 %v2198_v39, %v2706_v40 }
 0x161   : > { %v718_v42 = vpop.f32.mrf.mxu0  ;;  %v842_v43 = vpack.c.bf16 %v824_v34, %v823_v32 }
 0x162   : > { %v822_v44 = vsel %vm758_vm13, %v706_v31, %v790_v41  ;;  %v719_v45 = vadd.f32 %v2706_v40, %v718_v42  ;;  %v795_v46 = vmul.f32 0.2, %v727_v35  ;;  %vm763_vm14 = vcmp.gt.f32.partialorder %v727_v35, 0.0 }
 0x163   : > { %v841_v36 = vpack.c.bf16 %v822_v44, %v821_v33  ;;  %v2199_v37 = vpop.f32.mrf.mxu0 }
 0x164   : > { %v793_v47 = vmul.f32 0.2, %v719_v45  ;;  %v730_v48 = vadd.f32 %v2199_v37, %v2706_v40  ;;  %vm761_vm15 = vcmp.gt.f32.partialorder %v719_v45, 0.0  ;;  %v827_v52 = vsel %vm763_vm14, %v727_v35, %v795_v46 }
 0x165   : > { %2232 = vmatprep.mubr.msk.bf16.mxu1 %vm884_vm4, %v841_v36  ;;  %v721_v49 = vpop.f32.mrf.mxu0 }
 0x166   : > { %2233 = vmatmul.mubr.msk.bf16.gmra.mxu1 %vm884_vm4, %v842_v43  ;;  %vm764_vm0 = vcmp.gt.f32.partialorder %v730_v48, 0.0  ;;  %v796_v50 = vmul.f32 0.2, %v730_v48  ;;  %v722_v51 = vadd.f32 %v2706_v40, %v721_v49  ;;  %v825_v53 = vsel %vm761_vm15, %v719_v45, %v793_v47  ;;  %v2357_v40 = vld [vmem:[#allocation5 + $0x10] ss:$8 sps:$4 sm:$0xff]  }
 0x167   : > { %1327 = vmatpush1.bf16.msra.mxu0 %v2357_v40  ;;  %2254 = vmatpush1.bf16.msra.mxu1 %v2357_v40 }
 0x168   : > { %v828_v54 = vsel %vm764_vm0, %v730_v48, %v796_v50  ;;  %vm762_vm1 = vcmp.gt.f32.partialorder %v722_v51, 0.0  ;;  %v794_v55 = vmul.f32 0.2, %v722_v51  ;;  %1328 = vmatprep.subr.bf16.mxu0 %v2362_v61  ;;  %2247 = vmatprep.subr.bf16.mxu1 %v2362_v61 }
 0x169   : > { %v844_v56 = vpack.c.bf16 %v828_v54, %v827_v52 }
 0x16a   : > { %v826_v57 = vsel %vm762_vm1, %v722_v51, %v794_v55 }
 0x16b   : > { %v843_v38 = vpack.c.bf16 %v826_v57, %v825_v53  ;;  %1329 = vmatpush1.bf16.msra.mxu0 %v2360_v62  ;;  %2255 = vmatpush1.bf16.msra.mxu1 %v2360_v62 }
 0x16d   : > { %2236 = vmatprep.mubr.msk.bf16.mxu1 %vm884_vm4, %v843_v38 }
 0x16e   : > { %2237 = vmatmul.mubr.msk.bf16.gmra.mxu1 %vm884_vm4, %v844_v56 }
 0x16f   : > { %1416 = vmatprep.mubr.bf16.mxu1 %v2463_v63 }
 0x1f6   : > { %v2210_v0 = vpop.f32.mrf.mxu1 }
 0x1f7   : > { %v976_v12 = vadd.f32 %v2210_v0, %v2768_v1 }
 0x1f8   : > { %v967_v2 = vpop.f32.mrf.mxu1 }
 0x1f9   : > { %v968_v3 = vadd.f32 %v2768_v1, %v967_v2  ;;  %v1128_v19 = vmul.f32 0.2, %v976_v12  ;;  %vm1096_vm5 = vcmp.gt.f32.partialorder %v976_v12, 0.0 }
 0x1fa   : > { %v2211_v4 = vpop.f32.mrf.mxu1 }
 0x1fb   : > { %v1126_v6 = vmul.f32 0.2, %v968_v3  ;;  %vm1094_vm4 = vcmp.gt.f32.partialorder %v968_v3, 0.0  ;;  %v979_v9 = vadd.f32 %v2211_v4, %v2768_v1  ;;  %v1160_v25 = vsel %vm1096_vm5, %v976_v12, %v1128_v19 }
 0x1fc   : > { %v970_v5 = vpop.f32.mrf.mxu1 }
 0x1fd   : > { %v971_v7 = vadd.f32 %v2768_v1, %v970_v5  ;;  %v1158_v13 = vsel %vm1094_vm4, %v968_v3, %v1126_v6  ;;  %v1129_v17 = vmul.f32 0.2, %v979_v9  ;;  %vm1097_vm3 = vcmp.gt.f32.partialorder %v979_v9, 0.0 }
 0x1fe   : > { %v2214_v8 = vpop.f32.mrf.mxu1 }
 0x1ff   : > { %vm1095_vm2 = vcmp.gt.f32.partialorder %v971_v7, 0.0  ;;  %v1127_v10 = vmul.f32 0.2, %v971_v7  ;;  %v1161_v22 = vsel %vm1097_vm3, %v979_v9, %v1129_v17  ;;  %v992_v41 = vadd.f32 %v2214_v8, %v2768_v1 }
 0x200   : > { %v983_v11 = vpop.f32.mrf.mxu1  ;;  %v1191_v27 = vpack.c.bf16 %v1161_v22, %v1160_v25 }
 0x201   : > { %v1159_v14 = vsel %vm1095_vm2, %v971_v7, %v1127_v10  ;;  %v984_v24 = vadd.f32 %v2768_v1, %v983_v11  ;;  %v1132_v37 = vmul.f32 0.2, %v992_v41  ;;  %vm1100_vm11 = vcmp.gt.f32.partialorder %v992_v41, 0.0 }
 0x202   : > { %v1190_v15 = vpack.c.bf16 %v1159_v14, %v1158_v13  ;;  %v2215_v16 = vpop.f32.mrf.mxu1 }
 0x203   : > { %v1130_v30 = vmul.f32 0.2, %v984_v24  ;;  %vm1098_vm7 = vcmp.gt.f32.partialorder %v984_v24, 0.0  ;;  %v995_v32 = vadd.f32 %v2215_v16, %v2768_v1  ;;  %v1164_v57 = vsel %vm1100_vm11, %v992_v41, %v1132_v37 }
 0x204   : > { %v986_v18 = vpop.f32.mrf.mxu1  ;;  %1347 = vmatmul.mubr.bf16.vlgmr.msra.gmra.mxu0 %v1190_v15 }
 0x205   : > { %1356 = vmatprep.mubr.bf16.mxu0 %v2463_v63  ;;  %v987_v21 = vadd.f32 %v2768_v1, %v986_v18  ;;  %v1162_v35 = vsel %vm1098_vm7, %v984_v24, %v1130_v30  ;;  %v1133_v44 = vmul.f32 0.2, %v995_v32  ;;  %vm1101_vm8 = vcmp.gt.f32.partialorder %v995_v32, 0.0 }
 0x206   : > { %v2775_v20 = vpop.f32.mrf.mxu1 }
 0x207   : > { %v1131_v28 = vmul.f32 0.2, %v987_v21  ;;  %vm1099_vm6 = vcmp.gt.f32.partialorder %v987_v21, 0.0  ;;  %v1165_v52 = vsel %vm1101_vm8, %v995_v32, %v1133_v44  ;;  %v1008_v6 = vadd.f32 %v2775_v20, %v2768_v1 }
 0x208   : > { %v999_v23 = vpop.f32.mrf.mxu1  ;;  %v1193_v58 = vpack.c.bf16 %v1165_v52, %v1164_v57 }
 0x209   : > { %v1163_v39 = vsel %vm1099_vm6, %v987_v21, %v1131_v28  ;;  %v1000_v55 = vadd.f32 %v2768_v1, %v999_v23  ;;  %v1136_v18 = vmul.f32 0.2, %v1008_v6  ;;  %vm1104_vm4 = vcmp.gt.f32.partialorder %v1008_v6, 0.0 }
 0x20a   : > { %v2219_v26 = vpop.f32.mrf.mxu1  ;;  %v1192_v43 = vpack.c.bf16 %v1163_v39, %v1162_v35 }
 0x20b   : > { %v1134_v40 = vmul.f32 0.2, %v1000_v55  ;;  %vm1102_vm13 = vcmp.gt.f32.partialorder %v1000_v55, 0.0  ;;  %v1011_v0 = vadd.f32 %v2219_v26, %v2768_v1 }
 0x20c   : > { %v1002_v29 = vpop.f32.mrf.mxu1  ;;  %1357 = vmatmul.mubr.bf16.gmra.mxu0 %v1191_v27  ;;  %v1168_v27 = vsel %vm1104_vm4, %v1008_v6, %v1136_v18 }
 0x20d   : > { %1366 = vmatprep.mubr.bf16.mxu0 %v2463_v63  ;;  %v1003_v49 = vadd.f32 %v2768_v1, %v1002_v29  ;;  %v1166_v9 = vsel %vm1102_vm13, %v1000_v55, %v1134_v40  ;;  %v1137_v15 = vmul.f32 0.2, %v1011_v0  ;;  %vm1105_vm0 = vcmp.gt.f32.partialorder %v1011_v0, 0.0 }
 0x20e   : > { %v2222_v31 = vpop.f32.mrf.mxu1 }
 0x20f   : > { %v1024_v33 = vadd.f32 %v2222_v31, %v2768_v1  ;;  %v1135_v59 = vmul.f32 0.2, %v1003_v49  ;;  %vm1103_vm12 = vcmp.gt.f32.partialorder %v1003_v49, 0.0  ;;  %v1169_v22 = vsel %vm1105_vm0, %v1011_v0, %v1137_v15 }
 0x210   : > { %v2782_v34 = vpop.f32.mrf.mxu1  ;;  %v1195_v29 = vpack.c.bf16 %v1169_v22, %v1168_v27 }
 0x211   : > { %v1140_v45 = vmul.f32 0.2, %v1024_v33  ;;  %vm1108_vm9 = vcmp.gt.f32.partialorder %v1024_v33, 0.0  ;;  %v1167_v5 = vsel %vm1103_vm12, %v1003_v49, %v1135_v59  ;;  %v1016_v25 = vadd.f32 %v2768_v1, %v2782_v34 }
 0x212   : > { %v2223_v42 = vpop.f32.mrf.mxu1  ;;  %v1194_v13 = vpack.c.bf16 %v1167_v5, %v1166_v9 }
 0x213   : > { %v1027_v36 = vadd.f32 %v2223_v42, %v2768_v1  ;;  %v1172_v50 = vsel %vm1108_vm9, %v1024_v33, %v1140_v45  ;;  %v1138_v39 = vmul.f32 0.2, %v1016_v25  ;;  %vm1106_vm6 = vcmp.gt.f32.partialorder %v1016_v25, 0.0 }
 0x214   : > { %v1018_v46 = vpop.f32.mrf.mxu1  ;;  %1367 = vmatmul.mubr.bf16.gmra.mxu0 %v1192_v43 }
 0x215   : > { %vm1109_vm10 = vcmp.gt.f32.partialorder %v1027_v36, 0.0  ;;  %v1141_v47 = vmul.f32 0.2, %v1027_v36  ;;  %1376 = vmatprep.mubr.bf16.mxu0 %v2463_v63  ;;  %v1019_v20 = vadd.f32 %v2768_v1, %v1018_v46  ;;  %v1170_v45 = vsel %vm1106_vm6, %v1016_v25, %v1138_v39 }
 0x216   : > { %v2226_v48 = vpop.f32.mrf.mxu1 }
 0x217   : > { %v1173_v51 = vsel %vm1109_vm10, %v1027_v36, %v1141_v47  ;;  %v1040_v8 = vadd.f32 %v2226_v48, %v2768_v1  ;;  %v1139_v31 = vmul.f32 0.2, %v1019_v20  ;;  %vm1107_vm3 = vcmp.gt.f32.partialorder %v1019_v20, 0.0 }
 0x218   : > { %v1197_v53 = vpack.c.bf16 %v1173_v51, %v1172_v50  ;;  %v1031_v54 = vpop.f32.mrf.mxu1 }
 0x219   : > { %v1032_v56 = vadd.f32 %v2768_v1, %v1031_v54  ;;  %v1144_v19 = vmul.f32 0.2, %v1040_v8  ;;  %vm1112_vm2 = vcmp.gt.f32.partialorder %v1040_v8, 0.0  ;;  %v1171_v35 = vsel %vm1107_vm3, %v1019_v20, %v1139_v31 }
 0x21a   : > { %v2227_v38 = vpop.f32.mrf.mxu1  ;;  %1417 = vmatmul.mubr.bf16.vlgmr.msra.gmra.mxu1 %v1197_v53  ;;  %v1196_v46 = vpack.c.bf16 %v1171_v35, %v1170_v45 }
 0x21b   : > { %1426 = vmatprep.mubr.bf16.mxu1 %v2463_v63  ;;  %v1142_v61 = vmul.f32 0.2, %v1032_v56  ;;  %vm1110_vm14 = vcmp.gt.f32.partialorder %v1032_v56, 0.0  ;;  %v1043_v3 = vadd.f32 %v2227_v38, %v2768_v1  ;;  %v1176_v28 = vsel %vm1112_vm2, %v1040_v8, %v1144_v19 }
 0x21c   : > { %v1034_v60 = vpop.f32.mrf.mxu1  ;;  %1377 = vmatmul.mubr.bf16.gmra.mxu0 %v1193_v58 }
 0x21d   : > { %v1035_v62 = vadd.f32 %v2768_v1, %v1034_v60  ;;  %1386 = vmatprep.mubr.bf16.mxu0 %v2463_v63  ;;  %v1174_v10 = vsel %vm1110_vm14, %v1032_v56, %v1142_v61  ;;  %v1145_v16 = vmul.f32 0.2, %v1043_v3  ;;  %vm1113_vm1 = vcmp.gt.f32.partialorder %v1043_v3, 0.0 }
 0x21e   : > { %v2230_v2 = vpop.f32.mrf.mxu1 }
 0x21f   : > { %vm1111_vm15 = vcmp.gt.f32.partialorder %v1035_v62, 0.0  ;;  %v1143_v4 = vmul.f32 0.2, %v1035_v62  ;;  %v1177_v23 = vsel %vm1113_vm1, %v1043_v3, %v1145_v16  ;;  %v1056_v44 = vadd.f32 %v2230_v2, %v2768_v1 }
 0x220   : > { %v1047_v7 = vpop.f32.mrf.mxu1  ;;  %v1199_v30 = vpack.c.bf16 %v1177_v23, %v1176_v28 }
 0x221   : > { %v1175_v11 = vsel %vm1111_vm15, %v1035_v62, %v1143_v4  ;;  %v1048_v26 = vadd.f32 %v2768_v1, %v1047_v7  ;;  %v1148_v49 = vmul.f32 0.2, %v1056_v44  ;;  %vm1116_vm9 = vcmp.gt.f32.partialorder %v1056_v44, 0.0 }
 0x222   : > { %v2231_v12 = vpop.f32.mrf.mxu1  ;;  %v1198_v14 = vpack.c.bf16 %v1175_v11, %v1174_v10 }
 0x223   : > { %v1146_v41 = vmul.f32 0.2, %v1048_v26  ;;  %vm1114_vm7 = vcmp.gt.f32.partialorder %v1048_v26, 0.0  ;;  %v1059_v34 = vadd.f32 %v2231_v12, %v2768_v1  ;;  %v1180_v54 = vsel %vm1116_vm9, %v1056_v44, %v1148_v49 }
 0x224   : > { %v1050_v17 = vpop.f32.mrf.mxu1  ;;  %1387 = vmatmul.mubr.bf16.gmra.mxu0 %v1194_v13  ;;  %1427 = vmatmul.mubr.bf16.gmra.mxu1 %v1198_v14 }
 0x225   : > { %1396 = vmatprep.mubr.bf16.mxu0 %v2463_v63  ;;  %1436 = vmatprep.mubr.bf16.mxu1 %v2463_v63  ;;  %v1051_v21 = vadd.f32 %v2768_v1, %v1050_v17  ;;  %v1178_v36 = vsel %vm1114_vm7, %v1048_v26, %v1146_v41  ;;  %v1149_v47 = vmul.f32 0.2, %v1059_v34  ;;  %vm1117_vm8 = vcmp.gt.f32.partialorder %v1059_v34, 0.0 }
 0x226   : > { %v2234_v24 = vpop.f32.mrf.mxu1 }
 0x227   : > { %v1147_v32 = vmul.f32 0.2, %v1051_v21  ;;  %vm1115_vm5 = vcmp.gt.f32.partialorder %v1051_v21, 0.0  ;;  %v1181_v52 = vsel %vm1117_vm8, %v1059_v34, %v1149_v47  ;;  %v1072_v58 = vadd.f32 %v2234_v24, %v2768_v1  ;;  %v1222_v24 = vld [vmem:[%s3313_s6] sm:$0x3] }
 0x228   : > { %v1063_v33 = vpop.f32.mrf.mxu1  ;;  %v1201_v55 = vpack.c.bf16 %v1181_v52, %v1180_v54 }
 0x229   : > { %v1179_v42 = vsel %vm1115_vm5, %v1051_v21, %v1147_v32  ;;  %v1064_v50 = vadd.f32 %v2768_v1, %v1063_v33  ;;  %v1152_v0 = vmul.f32 0.2, %v1072_v58  ;;  %vm1120_vm12 = vcmp.gt.f32.partialorder %v1072_v58, 0.0 }
 0x22a   : > { %v2235_v43 = vpop.f32.mrf.mxu1  ;;  %v1200_v37 = vpack.c.bf16 %v1179_v42, %v1178_v36  ;;  %v1224_v21 = vlaneseq }
 0x22b   : > { %v1150_v56 = vmul.f32 0.2, %v1064_v50  ;;  %vm1118_vm10 = vcmp.gt.f32.partialorder %v1064_v50, 0.0  ;;  %v1075_v59 = vadd.f32 %v2235_v43, %v2768_v1  ;;  %v1184_v6 = vsel %vm1120_vm12, %v1072_v58, %v1152_v0 }
 0x22c   : > { %1397 = vmatmul.mubr.bf16.gmra.mxu0 %v1195_v29  ;;  %1437 = vmatmul.mubr.bf16.gmra.mxu1 %v1199_v30  ;;  %v1066_v48 = vpop.f32.mrf.mxu1  ;;  %v1225_v22 = vshrl.u32 %v1224_v21, 7 }
 0x22d   : > { %1406 = vmatprep.mubr.bf16.mxu0 %v2463_v63  ;;  %1446 = vmatprep.mubr.bf16.mxu1 %v2463_v63  ;;  %v1067_v51 = vadd.f32 %v2768_v1, %v1066_v48  ;;  %v1182_v60 = vsel %vm1118_vm10, %v1064_v50, %v1150_v56  ;;  %v1153_v2 = vmul.f32 0.2, %v1075_v59  ;;  %vm1121_vm13 = vcmp.gt.f32.partialorder %v1075_v59, 0.0 }
 0x22e   : > { %v2238_v53 = vpop.f32.mrf.mxu1  ;;  %v1226_v23 = vsub.s32 0, %v1225_v22  ;;  %v1230_v25 = vsub.s32 1, %v1225_v22  ;;  %v1708_v27 = vsub.s32 2, %v1225_v22 }
 0x22f   : > { %v1151_v57 = vmul.f32 0.2, %v1067_v51  ;;  %vm1119_vm11 = vcmp.gt.f32.partialorder %v1067_v51, 0.0  ;;  %v1185_v7 = vsel %vm1121_vm13, %v1075_v59, %v1153_v2  ;;  %v1088_v11 = vadd.f32 %v2238_v53, %v2768_v1 }
 0x230   : > { %v1079_v38 = vpop.f32.mrf.mxu1  ;;  %v1203_v8 = vpack.c.bf16 %v1185_v7, %v1184_v6  ;;  %v2828_v28 = vrot.slane %v1222_v24, %v1226_v23 }
 0x231   : > { %v1183_v40 = vsel %vm1119_vm11, %v1067_v51, %v1151_v57  ;;  %v1080_v4 = vadd.f32 %v2768_v1, %v1079_v38  ;;  %v1156_v16 = vmul.f32 0.2, %v1088_v11  ;;  %vm1124_vm0 = vcmp.gt.f32.partialorder %v1088_v11, 0.0 }
 0x232   : > { %v2239_v61 = vpop.f32.mrf.mxu1  ;;  %v1202_v62 = vpack.c.bf16 %v1183_v40, %v1182_v60 }
 0x233   : > { %v1154_v9 = vmul.f32 0.2, %v1080_v4  ;;  %vm1122_vm14 = vcmp.gt.f32.partialorder %v1080_v4, 0.0  ;;  %v1091_v12 = vadd.f32 %v2239_v61, %v2768_v1  ;;  %v1188_v18 = vsel %vm1124_vm0, %v1088_v11, %v1156_v16 }
 0x234   : > { %1407 = vmatmul.mubr.bf16.gmra.mxu0 %v1196_v46  ;;  %1447 = vmatmul.mubr.bf16.gmra.mxu1 %v1200_v37  ;;  %v1082_v3 = vpop.f32.mrf.mxu1 }
 0x235   : > { %1456 = vmatprep.mubr.bf16.mxu1 %v2463_v63  ;;  %v1083_v5 = vadd.f32 %v2768_v1, %v1082_v3  ;;  %v1186_v13 = vsel %vm1122_vm14, %v1080_v4, %v1154_v9  ;;  %v1157_v17 = vmul.f32 0.2, %v1091_v12  ;;  %vm1125_vm1 = vcmp.gt.f32.partialorder %v1091_v12, 0.0  ;;  %v1699_v1 = vld [vmem:[%s3314_s7] sm:$0x3] }
 0x236   : > { %v1700_v26 = vunpack.c.l.bf16 %v1699_v1 }
 0x237   : > { %v1155_v10 = vmul.f32 0.2, %v1083_v5  ;;  %vm1123_vm15 = vcmp.gt.f32.partialorder %v1083_v5, 0.0  ;;  %v1189_v19 = vsel %vm1125_vm1, %v1091_v12, %v1157_v17 }
 0x238   : > { %v1205_v20 = vpack.c.bf16 %v1189_v19, %v1188_v18  ;;  %v1705_v30 = vrot.slane %v1700_v26, %v1226_v23  ;;  %v1709_v31 = vrot.slane %v1700_v26, %v1708_v27 }
 0x239   : > { %v1187_v14 = vsel %vm1123_vm15, %v1083_v5, %v1155_v10 }
 0x23a   : > { %v1204_v15 = vpack.c.bf16 %v1187_v14, %v1186_v13  ;;  %v2834_v35 = vrot.slane %v1705_v30, %v1226_v23  ;;  %v2836_v42 = vrot.slane %v1709_v31, %v1226_v23 }
 0x23c   : > { %1457 = vmatmul.mubr.bf16.gmra.mxu1 %v1201_v55 }
 0x23d   : > { %1466 = vmatprep.mubr.bf16.mxu1 %v2463_v63 }
 0x244   : > { %1467 = vmatmul.mubr.bf16.gmra.mxu1 %v1202_v62 }
 0x245   : > { %1476 = vmatprep.mubr.bf16.mxu1 %v2463_v63 }
 0x24c   : > { %1477 = vmatmul.mubr.bf16.gmra.mxu1 %v1203_v8 }
 0x24d   : > { %1486 = vmatprep.mubr.bf16.mxu1 %v2463_v63 }
 0x254   : > { %1487 = vmatmul.mubr.bf16.gmra.mxu1 %v1204_v15 }
 0x255   : > { %1496 = vmatprep.mubr.bf16.mxu1 %v2463_v63  ;;  %v2830_v63 = vrot.slane %v1222_v24, %v1230_v25 }
 0x25c   : > { %1497 = vmatmul.mubr.bf16.gmra.mxu1 %v1205_v20 }
 0x2c4   : > { %v1348_v29 = vpop.f32.mrf.mxu0 }
 0x2c5   : > { %v1349_v32 = vadd.f32 %v1348_v29, %v2828_v28 }
 0x2c6   : > { %v1350_v33 = vpop.f32.mrf.mxu0 }
 0x2c7   : > { %vm1507_vm4 = vcmp.gt.f32.partialorder %v1349_v32, 0.0  ;;  %v1571_v39 = vmul.f32 0.2, %v1349_v32  ;;  %v1351_v41 = vadd.f32 %v1350_v33, %v2830_v63 }
 0x2c8   : > { %v1352_v34 = vpop.f32.mrf.mxu0 }
 0x2c9   : > { %vm1508_vm2 = vcmp.gt.f32.partialorder %v1351_v41, 0.0  ;;  %v1572_v43 = vmul.f32 0.2, %v1351_v41  ;;  %v1353_v44 = vadd.f32 %v1352_v34, %v2828_v28  ;;  %v1635_v45 = vsel %vm1507_vm4, %v1349_v32, %v1571_v39 }
 0x2ca   : > { %v1354_v36 = vpop.f32.mrf.mxu0  ;;  %v1720_v49 = vmul.f32 %v2834_v35, %v1635_v45 }
 0x2cb   : > { %vm1509_vm3 = vcmp.gt.f32.partialorder %v1353_v44, 0.0  ;;  %v1573_v46 = vmul.f32 0.2, %v1353_v44  ;;  %v1355_v37 = vadd.f32 %v1354_v36, %v2830_v63  ;;  %v1636_v47 = vsel %vm1508_vm2, %v1351_v41, %v1572_v43 }
 0x2cc   : > { %v1358_v48 = vpop.f32.mrf.mxu0  ;;  %v1721_v50 = vmul.f32 %v2836_v42, %v1636_v47 }
 0x2cd   : > { %vm1510_vm5 = vcmp.gt.f32.partialorder %v1355_v37, 0.0  ;;  %v1574_v51 = vmul.f32 0.2, %v1355_v37  ;;  %v1359_v52 = vadd.f32 %v1358_v48, %v2828_v28  ;;  %v1637_v53 = vsel %vm1509_vm3, %v1353_v44, %v1573_v46 }
 0x2ce   : > { %v1360_v54 = vpop.f32.mrf.mxu0  ;;  %v1784_v55 = vadd.f32 %v1721_v50, %v1720_v49  ;;  %v1722_v59 = vmul.f32 %v2834_v35, %v1637_v53 }
 0x2cf   : > { %vm1511_vm6 = vcmp.gt.f32.partialorder %v1359_v52, 0.0  ;;  %v1575_v56 = vmul.f32 0.2, %v1359_v52  ;;  %v1361_v57 = vadd.f32 %v1360_v54, %v2830_v63  ;;  %v1638_v38 = vsel %vm1510_vm5, %v1355_v37, %v1574_v51 }
 0x2d0   : > { %v1362_v58 = vpop.f32.mrf.mxu0  ;;  %1785 = vadd.xlane.f32.xlu0 %v1784_v55  ;;  %v1723_v60 = vmul.f32 %v2836_v42, %v1638_v38 }
 0x2d1   : > { %vm1512_vm7 = vcmp.gt.f32.partialorder %v1361_v57, 0.0  ;;  %v1576_v40 = vmul.f32 0.2, %v1361_v57  ;;  %v1363_v61 = vadd.f32 %v1362_v58, %v2828_v28  ;;  %v1639_v62 = vsel %vm1511_vm6, %v1359_v52, %v1575_v56 }
 0x2d2   : > { %v1364_v0 = vpop.f32.mrf.mxu0  ;;  %v1787_v2 = vadd.f32 %v1723_v60, %v1722_v59  ;;  %v1724_v7 = vmul.f32 %v2834_v35, %v1639_v62 }
 0x2d3   : > { %vm1513_vm8 = vcmp.gt.f32.partialorder %v1363_v61, 0.0  ;;  %v1577_v3 = vmul.f32 0.2, %v1363_v61  ;;  %v1365_v4 = vadd.f32 %v1364_v0, %v2830_v63  ;;  %v1640_v5 = vsel %vm1512_vm7, %v1361_v57, %v1576_v40 }
 0x2d4   : > { %v1368_v6 = vpop.f32.mrf.mxu0  ;;  %1788 = vadd.xlane.f32.xlu0 %v1787_v2  ;;  %v1725_v8 = vmul.f32 %v2836_v42, %v1640_v5 }
 0x2d5   : > { %vm1514_vm9 = vcmp.gt.f32.partialorder %v1365_v4, 0.0  ;;  %v1578_v9 = vmul.f32 0.2, %v1365_v4  ;;  %v1369_v10 = vadd.f32 %v1368_v6, %v2828_v28  ;;  %v1641_v11 = vsel %vm1513_vm8, %v1363_v61, %v1577_v3 }
 0x2d6   : > { %v1370_v12 = vpop.f32.mrf.mxu0  ;;  %v1790_v13 = vadd.f32 %v1725_v8, %v1724_v7  ;;  %v1726_v17 = vmul.f32 %v2834_v35, %v1641_v11 }
 0x2d7   : > { %v1371_v14 = vadd.f32 %v1370_v12, %v2830_v63  ;;  %v1642_v15 = vsel %vm1514_vm9, %v1365_v4, %v1578_v9  ;;  %v1579_v19 = vmul.f32 0.2, %v1369_v10  ;;  %vm1515_vm11 = vcmp.gt.f32.partialorder %v1369_v10, 0.0 }
 0x2d8   : > { %v1372_v16 = vpop.f32.mrf.mxu0  ;;  %1791 = vadd.xlane.f32.xlu1 %v1790_v13  ;;  %v1727_v18 = vmul.f32 %v2836_v42, %v1642_v15 }
 0x2d9   : > { %vm1516_vm10 = vcmp.gt.f32.partialorder %v1371_v14, 0.0  ;;  %v1580_v20 = vmul.f32 0.2, %v1371_v14  ;;  %v1373_v21 = vadd.f32 %v1372_v16, %v2828_v28  ;;  %v1643_v32 = vsel %vm1515_vm11, %v1369_v10, %v1579_v19 }
 0x2da   : > { %v1374_v22 = vpop.f32.mrf.mxu0  ;;  %v1418_v23 = vpop.f32.mrf.mxu1  ;;  %v1793_v1 = vadd.f32 %v1727_v18, %v1726_v17  ;;  %v1728_v47 = vmul.f32 %v2834_v35, %v1643_v32 }
 0x2db   : > { %v1375_v24 = vadd.f32 %v1374_v22, %v2830_v63  ;;  %v1419_v25 = vadd.f32 %v1418_v23, %v2828_v28  ;;  %v1644_v29 = vsel %vm1516_vm10, %v1371_v14, %v1580_v20  ;;  %v1581_v30 = vmul.f32 0.2, %v1373_v21 }
 0x2dc   : > { %v1378_v26 = vpop.f32.mrf.mxu0  ;;  %v1420_v27 = vpop.f32.mrf.mxu1  ;;  %1794 = vadd.xlane.f32.xlu1 %v1793_v1  ;;  %vm1517_vm13 = vcmp.gt.f32.partialorder %v1373_v21, 0.0  ;;  %v1729_v34 = vmul.f32 %v2836_v42, %v1644_v29 }
 0x2dd   : > { %vm1518_vm12 = vcmp.gt.f32.partialorder %v1375_v24, 0.0  ;;  %v1582_v31 = vmul.f32 0.2, %v1375_v24  ;;  %v1421_v33 = vadd.f32 %v1420_v27, %v2830_v63  ;;  %v1599_v43 = vmul.f32 0.2, %v1419_v25 }
 0x2de   : > { %v1380_v39 = vpop.f32.mrf.mxu0  ;;  %v1422_v41 = vpop.f32.mrf.mxu1  ;;  %vm1535_vm14 = vcmp.gt.f32.partialorder %v1419_v25, 0.0  ;;  %v1379_v48 = vadd.f32 %v1378_v26, %v2828_v28  ;;  %v1645_v49 = vsel %vm1517_vm13, %v1373_v21, %v1581_v30  ;;  %v1796_v51 = vadd.f32 %v1729_v34, %v1728_v47 }
 0x2df   : > { %v1423_v44 = vadd.f32 %v1422_v41, %v2828_v28  ;;  %v1646_v45 = vsel %vm1518_vm12, %v1375_v24, %v1582_v31  ;;  %vm1536_vm15 = vcmp.gt.f32.partialorder %v1421_v33, 0.0  ;;  %v1600_v36 = vmul.f32 0.2, %v1421_v33 }
 0x2e0   : > { %v1382_v46 = vpop.f32.mrf.mxu0  ;;  %v1424_v37 = vpop.f32.mrf.mxu1  ;;  %v1731_v53 = vmul.f32 %v2836_v42, %v1646_v45  ;;  %v1381_v54 = vadd.f32 %v1380_v39, %v2830_v63  ;;  %v1663_v56 = vsel %vm1535_vm14, %v1419_v25, %v1599_v43  ;;  %1797 = vadd.xlane.f32.xlu0 %v1796_v51  ;;  %v1730_v60 = vmul.f32 %v2834_v35, %v1645_v49 }
 0x2e1   : > { %v1425_v50 = vadd.f32 %v1424_v37, %v2830_v63  ;;  %v1601_v55 = vmul.f32 0.2, %v1423_v44  ;;  %v1664_v57 = vsel %vm1536_vm15, %v1421_v33, %v1600_v36  ;;  %vm1537_vm0 = vcmp.gt.f32.partialorder %v1423_v44, 0.0 }
 0x2e2   : > { %v1384_v52 = vpop.f32.mrf.mxu0  ;;  %v1583_v40 = vmul.f32 0.2, %v1379_v48  ;;  %v1383_v61 = vadd.f32 %v1382_v46, %v2828_v28  ;;  %v1799_v62 = vadd.f32 %v1731_v53, %v1730_v60  ;;  %v1748_v3 = vmul.f32 %v2834_v35, %v1663_v56 }
 0x2e3   : > { %vm1538_vm1 = vcmp.gt.f32.partialorder %v1425_v50, 0.0  ;;  %v1602_v38 = vmul.f32 0.2, %v1425_v50  ;;  %v1749_v4 = vmul.f32 %v2836_v42, %v1664_v57  ;;  %vm1519_vm4 = vcmp.gt.f32.partialorder %v1379_v48, 0.0 }
 0x2e4   : > { %v1388_v58 = vpop.f32.mrf.mxu0  ;;  %v1428_v59 = vpop.f32.mrf.mxu1  ;;  %v1385_v6 = vadd.f32 %v1384_v52, %v2830_v63  ;;  %v1665_v8 = vsel %vm1537_vm0, %v1423_v44, %v1601_v55  ;;  %vm1520_vm2 = vcmp.gt.f32.partialorder %v1381_v54, 0.0  ;;  %v1584_v9 = vmul.f32 0.2, %v1381_v54  ;;  %1800 = vadd.xlane.f32.xlu1 %v1799_v62 }
 0x2e5   : > { %v1666_v5 = vsel %vm1538_vm1, %v1425_v50, %v1602_v38  ;;  %v2871_v7 = vadd.f32 %v1388_v58, %v2828_v28  ;;  %v1826_v10 = vadd.f32 %v1749_v4, %v1748_v3  ;;  %vm1521_vm3 = vcmp.gt.f32.partialorder %v1383_v61, 0.0 }
 0x2e6   : > { %v1390_v0 = vpop.f32.mrf.mxu0  ;;  %v1430_v2 = vpop.f32.mrf.mxu1  ;;  %v1585_v13 = vmul.f32 0.2, %v1383_v61  ;;  %v2875_v14 = vadd.f32 %v1428_v59, %v2828_v28  ;;  %v1751_v15 = vmul.f32 %v2836_v42, %v1666_v5  ;;  %v1750_v20 = vmul.f32 %v2834_v35, %v1665_v8 }
 0x2e7   : > { %v1391_v16 = vadd.f32 %v1390_v0, %v2830_v63  ;;  %v2880_v17 = vadd.f32 %v1430_v2, %v2830_v63  ;;  %1827 = vadd.xlane.f32.xlu0 %v1826_v10  ;;  %v1647_v21 = vsel %vm1519_vm4, %v1379_v48, %v1583_v40  ;;  %vm1522_vm5 = vcmp.gt.f32.partialorder %v1385_v6, 0.0 }
 0x2e8   : > { %v1392_v11 = vpop.f32.mrf.mxu0  ;;  %v1432_v12 = vpop.f32.mrf.mxu1  ;;  %v1586_v22 = vmul.f32 0.2, %v1385_v6  ;;  %vm1523_vm6 = vcmp.gt.f32.partialorder %v2871_v7, 0.0  ;;  %v1587_v1 = vmul.f32 0.2, %v2871_v7  ;;  %v1829_v25 = vadd.f32 %v1751_v15, %v1750_v20 }
 0x2e9   : > { %v2886_v23 = vadd.f32 %v1392_v11, %v2828_v28  ;;  %v2890_v24 = vadd.f32 %v1432_v12, %v2828_v28  ;;  %v1648_v26 = vsel %vm1520_vm2, %v1381_v54, %v1584_v9  ;;  %v2894_v30 = vmul.f32 0.2, %v2875_v14 }
 0x2ea   : > { %v1394_v18 = vpop.f32.mrf.mxu0  ;;  %v1434_v19 = vpop.f32.mrf.mxu1  ;;  %v1732_v32 = vmul.f32 %v2834_v35, %v1647_v21  ;;  %v1733_v33 = vmul.f32 %v2836_v42, %v1648_v26  ;;  %vm1539_vm7 = vcmp.gt.f32.partialorder %v2875_v14, 0.0  ;;  %vm1524_vm8 = vcmp.gt.f32.partialorder %v1391_v16, 0.0  ;;  %1830 = vadd.xlane.f32.xlu1 %v1829_v25 }
 0x2eb   : > { %v2897_v31 = vadd.f32 %v1394_v18, %v2830_v63  ;;  %v1588_v39 = vmul.f32 0.2, %v1391_v16  ;;  %vm1540_vm9 = vcmp.gt.f32.partialorder %v2880_v17, 0.0  ;;  %v2904_v41 = vadd.f32 %v1434_v19, %v2830_v63 }
 0x2ec   : > { %v1398_v27 = vpop.f32.mrf.mxu0  ;;  %v1438_v29 = vpop.f32.mrf.mxu1  ;;  %v1604_v44 = vmul.f32 0.2, %v2880_v17  ;;  %vm1525_vm10 = vcmp.gt.f32.partialorder %v2886_v23, 0.0  ;;  %v1802_v45 = vadd.f32 %v1733_v33, %v1732_v32  ;;  %v1589_v46 = vmul.f32 0.2, %v2886_v23 }
 0x2ed   : > { %v2909_v36 = vadd.f32 %v1398_v27, %v2828_v28  ;;  %vm1541_vm11 = vcmp.gt.f32.partialorder %v2890_v24, 0.0  ;;  %v2914_v37 = vadd.f32 %v1438_v29, %v2828_v28  ;;  %v1649_v47 = vsel %vm1521_vm3, %v1383_v61, %v1585_v13 }
 0x2ee   : > { %v1400_v34 = vpop.f32.mrf.mxu0  ;;  %v1440_v43 = vpop.f32.mrf.mxu1  ;;  %v1605_v50 = vmul.f32 0.2, %v2890_v24  ;;  %vm1526_vm12 = vcmp.gt.f32.partialorder %v2897_v31, 0.0  ;;  %1803 = vadd.xlane.f32.xlu0 %v1802_v45  ;;  %v1650_v52 = vsel %vm1522_vm5, %v1385_v6, %v1586_v22  ;;  %v1590_v53 = vmul.f32 0.2, %v2897_v31 }
 0x2ef   : > { %v2920_v51 = vadd.f32 %v1400_v34, %v2830_v63  ;;  %v2925_v54 = vmul.f32 0.2, %v2904_v41  ;;  %v2928_v55 = vadd.f32 %v1440_v43, %v2830_v63  ;;  %vm1542_vm13 = vcmp.gt.f32.partialorder %v2904_v41, 0.0 }
 0x2f0   : > { %v1402_v48 = vpop.f32.mrf.mxu0  ;;  %v1442_v49 = vpop.f32.mrf.mxu1  ;;  %v2935_v58 = vmul.f32 0.2, %v2909_v36  ;;  %v1734_v59 = vmul.f32 %v2834_v35, %v1649_v47  ;;  %v1735_v60 = vmul.f32 %v2836_v42, %v1650_v52  ;;  %vm1527_vm14 = vcmp.gt.f32.partialorder %v2909_v36, 0.0 }
 0x2f1   : > { %v2931_v56 = vadd.f32 %v1402_v48, %v2828_v28  ;;  %v2940_v40 = vadd.f32 %v1442_v49, %v2828_v28  ;;  %v2944_v61 = vmul.f32 0.2, %v2914_v37  ;;  %v1651_v62 = vsel %vm1523_vm6, %v2871_v7, %v1587_v1 }
 0x2f2   : > { %v1404_v57 = vpop.f32.mrf.mxu0  ;;  %v1444_v38 = vpop.f32.mrf.mxu1  ;;  %v1652_v0 = vsel %vm1524_vm8, %v1391_v16, %v1588_v39  ;;  %vm1528_vm15 = vcmp.gt.f32.partialorder %v2920_v51, 0.0  ;;  %v1805_v5 = vadd.f32 %v1735_v60, %v1734_v59  ;;  %v1736_v6 = vmul.f32 %v2834_v35, %v1651_v62 }
 0x2f3   : > { %v2951_v2 = vadd.f32 %v1404_v57, %v2830_v63  ;;  %v1737_v8 = vmul.f32 %v2836_v42, %v1652_v0  ;;  %v1592_v9 = vmul.f32 0.2, %v2920_v51  ;;  %v2958_v10 = vmul.f32 0.2, %v2928_v55 }
 0x2f4   : > { %v1408_v3 = vpop.f32.mrf.mxu0  ;;  %v1448_v4 = vpop.f32.mrf.mxu1  ;;  %vm1529_vm0 = vcmp.gt.f32.partialorder %v2931_v56, 0.0  ;;  %v2962_v7 = vadd.f32 %v1444_v38, %v2830_v63  ;;  %1806 = vadd.xlane.f32.xlu1 %v1805_v5  ;;  %v1593_v13 = vmul.f32 0.2, %v2931_v56  ;;  %v2966_v15 = vmul.f32 0.2, %v2940_v40 }
 0x2f5   : > { %v1808_v16 = vadd.f32 %v1737_v8, %v1736_v6  ;;  %v1653_v18 = vsel %vm1525_vm10, %v2886_v23, %v1589_v46  ;;  %vm1543_vm1 = vcmp.gt.f32.partialorder %v2914_v37, 0.0  ;;  %vm1530_vm4 = vcmp.gt.f32.partialorder %v2951_v2, 0.0 }
 0x2f6   : > { %v1410_v11 = vpop.f32.mrf.mxu0  ;;  %v1450_v12 = vpop.f32.mrf.mxu1  ;;  %v2974_v19 = vmul.f32 0.2, %v2951_v2  ;;  %v2977_v20 = vadd.f32 %v1408_v3, %v2828_v28  ;;  %v2980_v21 = vadd.f32 %v1448_v4, %v2828_v28  ;;  %vm1544_vm2 = vcmp.gt.f32.partialorder %v2928_v55, 0.0 }
 0x2f7   : > { %1809 = vadd.xlane.f32.xlu0 %v1808_v16  ;;  %v1654_v23 = vsel %vm1526_vm12, %v2897_v31, %v1590_v53  ;;  %v1738_v25 = vmul.f32 %v2834_v35, %v1653_v18  ;;  %v1667_v26 = vsel %vm1539_vm7, %v2875_v14, %v2894_v30  ;;  %v1668_v27 = vsel %vm1540_vm9, %v2880_v17, %v1604_v44 }
 0x2f8   : > { %v1412_v22 = vpop.f32.mrf.mxu0  ;;  %v1452_v1 = vpop.f32.mrf.mxu1  ;;  %vm1545_vm3 = vcmp.gt.f32.partialorder %v2940_v40, 0.0  ;;  %vm1546_vm5 = vcmp.gt.f32.partialorder %v2962_v7, 0.0  ;;  %v1739_v29 = vmul.f32 %v2836_v42, %v1654_v23  ;;  %v1752_v32 = vmul.f32 %v2834_v35, %v1667_v26 }
 0x2f9   : > { %v1753_v31 = vmul.f32 %v2836_v42, %v1668_v27  ;;  %v3000_v33 = vadd.f32 %v1410_v11, %v2830_v63  ;;  %v1610_v14 = vmul.f32 0.2, %v2962_v7  ;;  %v3004_v30 = vadd.f32 %v1450_v12, %v2830_v63 }
 0x2fa   : > { %v1454_v39 = vpop.f32.mrf.mxu1  ;;  %v3007_v17 = vadd.f32 %v1412_v22, %v2828_v28  ;;  %v1669_v34 = vsel %vm1541_vm11, %v2890_v24, %v1605_v50  ;;  %v3013_v43 = vmul.f32 0.2, %v2977_v20  ;;  %v3016_v44 = vmul.f32 0.2, %v2980_v21  ;;  %v1414_v47 = vpop.f32.mrf.mxu0 }
 0x2fb   : > { %v1811_v45 = vadd.f32 %v1739_v29, %v1738_v25  ;;  %v1832_v46 = vadd.f32 %v1753_v31, %v1752_v32  ;;  %vm1531_vm6 = vcmp.gt.f32.partialorder %v2977_v20, 0.0  ;;  %vm1532_vm7 = vcmp.gt.f32.partialorder %v3000_v33, 0.0 }
 0x2fc   : > { %v1458_v48 = vpop.f32.mrf.mxu1  ;;  %v1596_v49 = vmul.f32 0.2, %v3000_v33  ;;  %v3022_v52 = vmul.f32 0.2, %v3004_v30  ;;  %v3025_v24 = vadd.f32 %v1452_v1, %v2828_v28  ;;  %vm1533_vm8 = vcmp.gt.f32.partialorder %v3007_v17, 0.0 }
 0x2fd   : > { %1812 = vadd.xlane.f32.xlu1 %v1811_v45  ;;  %1833 = vadd.xlane.f32.xlu0 %v1832_v46  ;;  %v1597_v50 = vmul.f32 0.2, %v3007_v17  ;;  %v1670_v53 = vsel %vm1542_vm13, %v2904_v41, %v2925_v54  ;;  %v1754_v57 = vmul.f32 %v2834_v35, %v1669_v34  ;;  %v1655_v60 = vsel %vm1527_vm14, %v2909_v36, %v2935_v58 }
 0x2fe   : > { %v1460_v38 = vpop.f32.mrf.mxu1  ;;  %v1755_v59 = vmul.f32 %v2836_v42, %v1670_v53  ;;  %v1656_v62 = vsel %vm1528_vm15, %v2920_v51, %v1592_v9  ;;  %v1415_v0 = vadd.f32 %v1414_v47, %v2830_v63  ;;  %vm1547_vm9 = vcmp.gt.f32.partialorder %v2980_v21, 0.0 }
 0x2ff   : > { %v1740_v41 = vmul.f32 %v2834_v35, %v1655_v60  ;;  %v1741_v54 = vmul.f32 %v2836_v42, %v1656_v62  ;;  %v3047_v3 = vadd.f32 %v1454_v39, %v2830_v63  ;;  %v3050_v4 = vadd.f32 %v1458_v48, %v2828_v28 }
 0x300   : > { %v1462_v5 = vpop.f32.mrf.mxu1  ;;  %vm1548_vm10 = vcmp.gt.f32.partialorder %v3004_v30, 0.0  ;;  %v3054_v36 = vmul.f32 0.2, %v3025_v24  ;;  %v1835_v51 = vadd.f32 %v1755_v59, %v1754_v57  ;;  %vm1534_vm11 = vcmp.gt.f32.partialorder %v1415_v0, 0.0 }
 0x301   : > { %v1657_v58 = vsel %vm1529_vm0, %v2931_v56, %v1593_v13  ;;  %vm1549_vm12 = vcmp.gt.f32.partialorder %v3025_v24, 0.0  ;;  %v1814_v6 = vadd.f32 %v1741_v54, %v1740_v41  ;;  %v1598_v8 = vmul.f32 0.2, %v1415_v0 }
 0x302   : > { %vm1550_vm13 = vcmp.gt.f32.partialorder %v3047_v3, 0.0  ;;  %v1614_v9 = vmul.f32 0.2, %v3047_v3  ;;  %v1464_v11 = vpop.f32.mrf.mxu1  ;;  %1836 = vadd.xlane.f32.xlu1 %v1835_v51  ;;  %v3063_v12 = vmul.f32 0.2, %v3050_v4  ;;  %v1658_v16 = vsel %vm1530_vm4, %v2951_v2, %v2974_v19 }
 0x303   : > { %v1742_v56 = vmul.f32 %v2834_v35, %v1657_v58  ;;  %v1671_v13 = vsel %vm1543_vm1, %v2914_v37, %v2944_v61  ;;  %1815 = vadd.xlane.f32.xlu0 %v1814_v6  ;;  %v1743_v18 = vmul.f32 %v2836_v42, %v1658_v16  ;;  %v1672_v22 = vsel %vm1544_vm2, %v2928_v55, %v2958_v10 }
 0x304   : > { %v1756_v1 = vmul.f32 %v2834_v35, %v1671_v13  ;;  %v1461_v23 = vadd.f32 %v1460_v38, %v2830_v63  ;;  %v1468_v2 = vpop.f32.mrf.mxu1  ;;  %vm1551_vm14 = vcmp.gt.f32.partialorder %v3050_v4, 0.0  ;;  %v1757_v19 = vmul.f32 %v2836_v42, %v1672_v22 }
 0x305   : > { %v3084_v25 = vadd.f32 %v1462_v5, %v2828_v28  ;;  %v1673_v37 = vsel %vm1545_vm3, %v2940_v40, %v2966_v15  ;;  %v1674_v55 = vsel %vm1546_vm5, %v2962_v7, %v1610_v14  ;;  %v1817_v61 = vadd.f32 %v1743_v18, %v1742_v56 }
 0x306   : > { %vm1552_vm15 = vcmp.gt.f32.partialorder %v1461_v23, 0.0  ;;  %v1616_v10 = vmul.f32 0.2, %v1461_v23  ;;  %v1758_v26 = vmul.f32 %v2834_v35, %v1673_v37  ;;  %v1470_v27 = vpop.f32.mrf.mxu1  ;;  %v1838_v29 = vadd.f32 %v1757_v19, %v1756_v1 }
 0x307   : > { %vm1553_vm0 = vcmp.gt.f32.partialorder %v3084_v25, 0.0  ;;  %v1617_v32 = vmul.f32 0.2, %v3084_v25  ;;  %v1759_v31 = vmul.f32 %v2836_v42, %v1674_v55  ;;  %1818 = vadd.xlane.f32.xlu1 %v1817_v61  ;;  %v1659_v40 = vsel %vm1531_vm6, %v2977_v20, %v3013_v43 }
 0x308   : > { %v1660_v7 = vsel %vm1532_vm7, %v3000_v33, %v1596_v49  ;;  %v1465_v15 = vadd.f32 %v1464_v11, %v2830_v63  ;;  %v1469_v39 = vadd.f32 %v1468_v2, %v2828_v28  ;;  %v1472_v14 = vpop.f32.mrf.mxu1  ;;  %1839 = vadd.xlane.f32.xlu0 %v1838_v29  ;;  %v1744_v45 = vmul.f32 %v2834_v35, %v1659_v40 }
 0x309   : > { %v1841_v34 = vadd.f32 %v1759_v31, %v1758_v26  ;;  %v1745_v46 = vmul.f32 %v2836_v42, %v1660_v7  ;;  %v1661_v47 = vsel %vm1533_vm8, %v3007_v17, %v1597_v50  ;;  %v1662_v49 = vsel %vm1534_vm11, %v1415_v0, %v1598_v8 }
 0x30a   : > { %vm1554_vm1 = vcmp.gt.f32.partialorder %v1465_v15, 0.0  ;;  %v1618_v20 = vmul.f32 0.2, %v1465_v15  ;;  %vm1555_vm4 = vcmp.gt.f32.partialorder %v1469_v39, 0.0  ;;  %v1619_v43 = vmul.f32 0.2, %v1469_v39  ;;  %v1474_v33 = vpop.f32.mrf.mxu1 }
 0x30b   : > { %v1820_v48 = vadd.f32 %v1745_v46, %v1744_v45  ;;  %v1746_v53 = vmul.f32 %v2834_v35, %v1661_v47  ;;  %v1675_v57 = vsel %vm1547_vm9, %v2980_v21, %v3016_v44  ;;  %1842 = vadd.xlane.f32.xlu1 %v1841_v34  ;;  %v1747_v38 = vmul.f32 %v2836_v42, %v1662_v49 }
 0x30c   : > { %v1676_v17 = vsel %vm1548_vm10, %v3004_v30, %v3022_v52  ;;  %v1760_v50 = vmul.f32 %v2834_v35, %v1675_v57  ;;  %v1471_v59 = vadd.f32 %v1470_v27, %v2830_v63  ;;  %v1478_v60 = vpop.f32.mrf.mxu1  ;;  %v1473_v0 = vadd.f32 %v1472_v14, %v2828_v28 }
 0x30d   : > { %1821 = vadd.xlane.f32.xlu0 %v1820_v48  ;;  %v1761_v62 = vmul.f32 %v2836_v42, %v1676_v17  ;;  %v1677_v21 = vsel %vm1549_vm12, %v3025_v24, %v3054_v36  ;;  %v1678_v44 = vsel %vm1550_vm13, %v3047_v3, %v1614_v9  ;;  %v1823_v30 = vadd.f32 %v1747_v38, %v1746_v53 }
 0x30e   : > { %vm1556_vm2 = vcmp.gt.f32.partialorder %v1471_v59, 0.0  ;;  %v1620_v52 = vmul.f32 0.2, %v1471_v59  ;;  %v1762_v41 = vmul.f32 %v2834_v35, %v1677_v21  ;;  %v1480_v54 = vpop.f32.mrf.mxu1  ;;  %vm1557_vm3 = vcmp.gt.f32.partialorder %v1473_v0, 0.0 }
 0x30f   : > { %v1844_v5 = vadd.f32 %v1761_v62, %v1760_v50  ;;  %v1621_v51 = vmul.f32 0.2, %v1473_v0  ;;  %v1763_v58 = vmul.f32 %v2836_v42, %v1678_v44  ;;  %1824 = vadd.xlane.f32.xlu1 %v1823_v30  ;;  %v1679_v24 = vsel %vm1551_vm14, %v3050_v4, %v3063_v12 }
 0x310   : > { %v1680_v36 = vsel %vm1552_vm15, %v1461_v23, %v1616_v10  ;;  %v1475_v3 = vadd.f32 %v1474_v33, %v2830_v63  ;;  %v1479_v6 = vadd.f32 %v1478_v60, %v2828_v28  ;;  %v1482_v8 = vpop.f32.mrf.mxu1  ;;  %v1764_v11 = vmul.f32 %v2834_v35, %v1679_v24 }
 0x311   : > { %1845 = vadd.xlane.f32.xlu0 %v1844_v5  ;;  %v1847_v9 = vadd.f32 %v1763_v58, %v1762_v41  ;;  %v1765_v16 = vmul.f32 %v2836_v42, %v1680_v36  ;;  %v1681_v56 = vsel %vm1553_vm0, %v3084_v25, %v1617_v32  ;;  %v1682_v22 = vsel %vm1554_vm1, %v1465_v15, %v1618_v20 }
 0x312   : > { %vm1558_vm5 = vcmp.gt.f32.partialorder %v1475_v3, 0.0  ;;  %v1622_v13 = vmul.f32 0.2, %v1475_v3  ;;  %vm1559_vm6 = vcmp.gt.f32.partialorder %v1479_v6, 0.0  ;;  %v1623_v4 = vmul.f32 0.2, %v1479_v6  ;;  %v1484_v12 = vpop.f32.mrf.mxu1 }
 0x313   : > { %v1850_v18 = vadd.f32 %v1765_v16, %v1764_v11  ;;  %v1766_v1 = vmul.f32 %v2834_v35, %v1681_v56  ;;  %v1481_v23 = vadd.f32 %v1480_v54, %v2830_v63  ;;  %1848 = vadd.xlane.f32.xlu1 %v1847_v9  ;;  %v1767_v2 = vmul.f32 %v2836_v42, %v1682_v22 }
 0x314   : > { %v1483_v19 = vadd.f32 %v1482_v8, %v2828_v28  ;;  %v1683_v37 = vsel %vm1555_vm4, %v1469_v39, %v1619_v43  ;;  %v1684_v25 = vsel %vm1556_vm2, %v1471_v59, %v1620_v52  ;;  %v1488_v55 = vpop.f32.mrf.mxu1  ;;  %v1485_v32 = vadd.f32 %v1484_v12, %v2830_v63 }
 0x315   : > { %1851 = vadd.xlane.f32.xlu0 %v1850_v18  ;;  %vm1560_vm7 = vcmp.gt.f32.partialorder %v1481_v23, 0.0  ;;  %v1624_v61 = vmul.f32 0.2, %v1481_v23  ;;  %v1768_v10 = vmul.f32 %v2834_v35, %v1683_v37  ;;  %v1769_v26 = vmul.f32 %v2836_v42, %v1684_v25 }
 0x316   : > { %v1853_v27 = vadd.f32 %v1767_v2, %v1766_v1  ;;  %vm1561_vm8 = vcmp.gt.f32.partialorder %v1483_v19, 0.0  ;;  %v1625_v29 = vmul.f32 0.2, %v1483_v19  ;;  %v1490_v31 = vpop.f32.mrf.mxu1  ;;  %v1489_v7 = vadd.f32 %v1488_v55, %v2828_v28 }
 0x317   : > { %v1856_v40 = vadd.f32 %v1769_v26, %v1768_v10  ;;  %v1685_v15 = vsel %vm1557_vm3, %v1473_v0, %v1621_v51  ;;  %v1686_v39 = vsel %vm1558_vm5, %v1475_v3, %v1622_v13  ;;  %vm1562_vm9 = vcmp.gt.f32.partialorder %v1485_v32, 0.0 }
 0x318   : > { %1854 = vadd.xlane.f32.xlu1 %v1853_v27  ;;  %v1626_v14 = vmul.f32 0.2, %v1485_v32  ;;  %v1770_v34 = vmul.f32 %v2834_v35, %v1685_v15  ;;  %v1771_v45 = vmul.f32 %v2836_v42, %v1686_v39  ;;  %v1492_v46 = vpop.f32.mrf.mxu1  ;;  %vm1563_vm10 = vcmp.gt.f32.partialorder %v1489_v7, 0.0 }
 0x319   : > { %1857 = vadd.xlane.f32.xlu0 %v1856_v40  ;;  %v1627_v47 = vmul.f32 0.2, %v1489_v7  ;;  %v1491_v20 = vadd.f32 %v1490_v31, %v2830_v63  ;;  %v1493_v43 = vadd.f32 %v1492_v46, %v2828_v28  ;;  %v1687_v48 = vsel %vm1559_vm6, %v1479_v6, %v1623_v4 }
 0x31a   : > { %v1859_v33 = vadd.f32 %v1771_v45, %v1770_v34  ;;  %v1688_v49 = vsel %vm1560_vm7, %v1481_v23, %v1624_v61  ;;  %v1494_v53 = vpop.f32.mrf.mxu1  ;;  %v1689_v57 = vsel %vm1561_vm8, %v1483_v19, %v1625_v29  ;;  %v1772_v50 = vmul.f32 %v2834_v35, %v1687_v48  ;;  %v3191_v29 = vld [vmem:[#allocation2] ss:$0 sm:$0xff] }
 0x31b   : > { %vm1564_vm11 = vcmp.gt.f32.partialorder %v1491_v20, 0.0  ;;  %v1628_v38 = vmul.f32 0.2, %v1491_v20  ;;  %vm1565_vm12 = vcmp.gt.f32.partialorder %v1493_v43, 0.0  ;;  %v1629_v17 = vmul.f32 0.2, %v1493_v43 }
 0x31c   : > { %1860 = vadd.xlane.f32.xlu1 %v1859_v33  ;;  %v1773_v59 = vmul.f32 %v2836_v42, %v1688_v49  ;;  %v1495_v60 = vadd.f32 %v1494_v53, %v2830_v63  ;;  %v1498_v62 = vpop.f32.mrf.mxu1  ;;  %v1690_v0 = vsel %vm1562_vm9, %v1485_v32, %v1626_v14  ;;  %v1774_v44 = vmul.f32 %v2834_v35, %v1689_v57 }
 0x31d   : > { %v1499_v21 = vadd.f32 %v1498_v62, %v2828_v28  ;;  %v1775_v30 = vmul.f32 %v2836_v42, %v1690_v0  ;;  %v1691_v52 = vsel %vm1563_vm10, %v1489_v7, %v1627_v47  ;;  %v1692_v51 = vsel %vm1564_vm11, %v1491_v20, %v1628_v38 }
 0x31e   : > { %v1862_v41 = vadd.f32 %v1773_v59, %v1772_v50  ;;  %vm1566_vm13 = vcmp.gt.f32.partialorder %v1495_v60, 0.0  ;;  %v1630_v54 = vmul.f32 0.2, %v1495_v60  ;;  %v1500_v5 = vpop.f32.mrf.mxu1  ;;  %v1776_v6 = vmul.f32 %v2834_v35, %v1691_v52 }
 0x31f   : > { %vm1567_vm14 = vcmp.gt.f32.partialorder %v1499_v21, 0.0  ;;  %v1631_v58 = vmul.f32 0.2, %v1499_v21  ;;  %v1865_v24 = vadd.f32 %v1775_v30, %v1774_v44  ;;  %v1501_v36 = vadd.f32 %v1500_v5, %v2830_v63 }
 0x320   : > { %1863 = vadd.xlane.f32.xlu0 %v1862_v41  ;;  %v1502_v3 = vpop.f32.mrf.mxu1  ;;  %v1777_v8 = vmul.f32 %v2836_v42, %v1692_v51  ;;  %v1693_v9 = vsel %vm1565_vm12, %v1493_v43, %v1629_v17  ;;  %v1694_v11 = vsel %vm1566_vm13, %v1495_v60, %v1630_v54  ;;  %vm1919_vm4 = vcmask 7168  }
 0x321   : > { %1866 = vadd.xlane.f32.xlu1 %v1865_v24  ;;  %vm1568_vm15 = vcmp.gt.f32.partialorder %v1501_v36, 0.0  ;;  %v1632_v16 = vmul.f32 0.2, %v1501_v36  ;;  %v1503_v56 = vadd.f32 %v1502_v3, %v2828_v28  ;;  %v1778_v12 = vmul.f32 %v2834_v35, %v1693_v9 }
 0x322   : > { %v1868_v13 = vadd.f32 %v1777_v8, %v1776_v6  ;;  %v1504_v4 = vpop.f32.mrf.mxu1  ;;  %v1779_v18 = vmul.f32 %v2836_v42, %v1694_v11  ;;  %v1695_v22 = vsel %vm1567_vm14, %v1499_v21, %v1631_v58 }
 0x323   : > { %vm1569_vm0 = vcmp.gt.f32.partialorder %v1503_v56, 0.0  ;;  %v1633_v1 = vmul.f32 0.2, %v1503_v56  ;;  %v1505_v23 = vadd.f32 %v1504_v4, %v2830_v63  ;;  %v1696_v2 = vsel %vm1568_vm15, %v1501_v36, %v1632_v16 }
 0x324   : > { %1869 = vadd.xlane.f32.xlu0 %v1868_v13  ;;  %v1871_v19 = vadd.f32 %v1779_v18, %v1778_v12  ;;  %v1780_v37 = vmul.f32 %v2834_v35, %v1695_v22  ;;  %v1781_v28 = vmul.f32 %v2836_v42, %v1696_v2 }
 0x325   : > { %vm1570_vm1 = vcmp.gt.f32.partialorder %v1505_v23, 0.0  ;;  %v1634_v25 = vmul.f32 0.2, %v1505_v23  ;;  %v1697_v55 = vsel %vm1569_vm0, %v1503_v56, %v1633_v1 }
 0x326   : > { %1872 = vadd.xlane.f32.xlu1 %v1871_v19  ;;  %v1874_v61 = vadd.f32 %v1781_v28, %v1780_v37  ;;  %v1782_v26 = vmul.f32 %v2834_v35, %v1697_v55 }
 0x327   : > { %v1698_v10 = vsel %vm1570_vm1, %v1505_v23, %v1634_v25 }
 0x328   : > { %1875 = vadd.xlane.f32.xlu0 %v1874_v61  ;;  %v1783_v27 = vmul.f32 %v2836_v42, %v1698_v10 }
 0x32a   : > { %v1877_v63 = vadd.f32 %v1783_v27, %v1782_v26 }
 0x32c   : > { %1878 = vadd.xlane.f32.xlu1 %v1877_v63 }
 0x359   : > { %v1786_v35 = vpop.xlane.xlu0 %1785 }
 0x35a   : > { %v1887_v42 = vadd.f32 %v3191_v29, %v1786_v35 }
 0x35c   : > { %1920 = vst.msk [vmem:[%s3196_s16] sm:$0xff] %vm1919_vm4, %v1887_v42 }
 0x35d   : > { %v1789_v32 = vpop.xlane.xlu0 %1788 }
 0x35e   : > { %v1888_v31 = vadd.f32 %v3191_v29, %v1789_v32 }
 0x360   : > { %1921 = vst.msk [vmem:[%s3196_s16 + $0x8] sm:$0xff] %vm1919_vm4, %v1888_v31 }
 0x361   : > { %v1792_v40 = vpop.xlane.xlu1 %1791 }
 0x362   : > { %v1889_v7 = vadd.f32 %v3191_v29, %v1792_v40 }
 0x364   : > { %1922 = vst.msk [vmem:[%s3196_s16 + $0x10] sm:$0xff] %vm1919_vm4, %v1889_v7 }
 0x365   : > { %v1795_v15 = vpop.xlane.xlu1 %1794 }
 0x366   : > { %v1890_v39 = vadd.f32 %v3191_v29, %v1795_v15 }
 0x368   : > { %1923 = vst.msk [vmem:[%s3196_s16 + $0x18] sm:$0xff] %vm1919_vm4, %v1890_v39 }
 0x369   : > { %v1798_v14 = vpop.xlane.xlu0 %1797 }
 0x36a   : > { %v1891_v34 = vadd.f32 %v3191_v29, %v1798_v14 }
 0x36c   : > { %1924 = vst.msk [vmem:[%s3196_s16 + $0x20] sm:$0xff] %vm1919_vm4, %v1891_v34 }
 0x36d   : > { %v1801_v45 = vpop.xlane.xlu1 %1800 }
 0x36e   : > { %v1892_v46 = vadd.f32 %v3191_v29, %v1801_v45 }
 0x370   : > { %v1828_v47 = vpop.xlane.xlu0 %1827  ;;  %1925 = vst.msk [vmem:[%s3196_s16 + $0x28] sm:$0xff] %vm1919_vm4, %v1892_v46 }
 0x371   : > { %v1901_v20 = vadd.f32 %v3191_v29, %v1828_v47 }
 0x373   : > { %1934 = vst.msk [vmem:[%s3196_s16 + $0x70] sm:$0xff] %vm1919_vm4, %v1901_v20  ;;  %v1831_v43 = vpop.xlane.xlu1 %1830 }
 0x374   : > { %v1902_v33 = vadd.f32 %v3191_v29, %v1831_v43 }
 0x376   : > { %1935 = vst.msk [vmem:[%s3196_s16 + $0x78] sm:$0xff] %vm1919_vm4, %v1902_v33 }
 0x377   : > { %v1804_v48 = vpop.xlane.xlu0 %1803 }
 0x378   : > { %v1893_v49 = vadd.f32 %v3191_v29, %v1804_v48 }
 0x37a   : > { %1926 = vst.msk [vmem:[%s3196_s16 + $0x30] sm:$0xff] %vm1919_vm4, %v1893_v49 }
 0x37d   : > { %v1807_v53 = vpop.xlane.xlu1 %1806 }
 0x37e   : > { %v1894_v57 = vadd.f32 %v3191_v29, %v1807_v53 }
 0x380   : > { %v1810_v38 = vpop.xlane.xlu0 %1809  ;;  %1927 = vst.msk [vmem:[%s3196_s16 + $0x38] sm:$0xff] %vm1919_vm4, %v1894_v57 }
 0x381   : > { %v1895_v17 = vadd.f32 %v3191_v29, %v1810_v38 }
 0x383   : > { %1928 = vst.msk [vmem:[%s3196_s16 + $0x40] sm:$0xff] %vm1919_vm4, %v1895_v17 }
 0x386   : > { %v1813_v50 = vpop.xlane.xlu1 %1812  ;;  %v1834_v59 = vpop.xlane.xlu0 %1833 }
 0x387   : > { %v1896_v60 = vadd.f32 %v3191_v29, %v1813_v50  ;;  %v1903_v62 = vadd.f32 %v3191_v29, %v1834_v59 }
 0x389   : > { %1929 = vst.msk [vmem:[%s3196_s16 + $0x48] sm:$0xff] %vm1919_vm4, %v1896_v60  ;;  %1936 = vst.msk [vmem:[%s3196_s16 + $0x80] sm:$0xff] %vm1919_vm4, %v1903_v62 }
 0x38b   : > { %v1837_v0 = vpop.xlane.xlu1 %1836 }
 0x38c   : > { %v1904_v21 = vadd.f32 %v3191_v29, %v1837_v0  ;;  %v1816_v44 = vpop.xlane.xlu0 %1815 }
 0x38d   : > { %v1897_v30 = vadd.f32 %v3191_v29, %v1816_v44 }
 0x38e   : > { %1937 = vst.msk [vmem:[%s3196_s16 + $0x88] sm:$0xff] %vm1919_vm4, %v1904_v21 }
 0x38f   : > { %1930 = vst.msk [vmem:[%s3196_s16 + $0x50] sm:$0xff] %vm1919_vm4, %v1897_v30 }
 0x390   : > { %v1819_v52 = vpop.xlane.xlu1 %1818 }
 0x391   : > { %v1898_v41 = vadd.f32 %v3191_v29, %v1819_v52  ;;  %v1840_v54 = vpop.xlane.xlu0 %1839 }
 0x392   : > { %v1905_v5 = vadd.f32 %v3191_v29, %v1840_v54 }
 0x393   : > { %1931 = vst.msk [vmem:[%s3196_s16 + $0x58] sm:$0xff] %vm1919_vm4, %v1898_v41 }
 0x394   : > { %1938 = vst.msk [vmem:[%s3196_s16 + $0x90] sm:$0xff] %vm1919_vm4, %v1905_v5  ;;  %v1843_v51 = vpop.xlane.xlu1 %1842 }
 0x395   : > { %v1906_v58 = vadd.f32 %v3191_v29, %v1843_v51 }
 0x396   : > { %v1822_v24 = vpop.xlane.xlu0 %1821 }
 0x397   : > { %v1899_v36 = vadd.f32 %v3191_v29, %v1822_v24  ;;  %1939 = vst.msk [vmem:[%s3196_s16 + $0x98] sm:$0xff] %vm1919_vm4, %v1906_v58 }
 0x398   : > { %v1825_v3 = vpop.xlane.xlu1 %1824 }
 0x399   : > { %1932 = vst.msk [vmem:[%s3196_s16 + $0x60] sm:$0xff] %vm1919_vm4, %v1899_v36  ;;  %v1900_v6 = vadd.f32 %v3191_v29, %v1825_v3 }
 0x39a   : > { %v1846_v8 = vpop.xlane.xlu0 %1845 }
 0x39b   : > { %v1907_v9 = vadd.f32 %v3191_v29, %v1846_v8  ;;  %1933 = vst.msk [vmem:[%s3196_s16 + $0x68] sm:$0xff] %vm1919_vm4, %v1900_v6 }
 0x39c   : > { %v1849_v11 = vpop.xlane.xlu1 %1848 }
 0x39d   : > { %1940 = vst.msk [vmem:[%s3196_s16 + $0xa0] sm:$0xff] %vm1919_vm4, %v1907_v9  ;;  %v1908_v16 = vadd.f32 %v3191_v29, %v1849_v11 }
 0x39e   : > { %v1852_v56 = vpop.xlane.xlu0 %1851 }
 0x39f   : > { %v1909_v13 = vadd.f32 %v3191_v29, %v1852_v56  ;;  %1941 = vst.msk [vmem:[%s3196_s16 + $0xa8] sm:$0xff] %vm1919_vm4, %v1908_v16 }
 0x3a1   : > { %1942 = vst.msk [vmem:[%s3196_s16 + $0xb0] sm:$0xff] %vm1919_vm4, %v1909_v13  ;;  %v1855_v4 = vpop.xlane.xlu1 %1854 }
 0x3a2   : > { %v1910_v12 = vadd.f32 %v3191_v29, %v1855_v4  ;;  %v1858_v18 = vpop.xlane.xlu0 %1857 }
 0x3a3   : > { %v1911_v22 = vadd.f32 %v3191_v29, %v1858_v18 }
 0x3a4   : > { %1943 = vst.msk [vmem:[%s3196_s16 + $0xb8] sm:$0xff] %vm1919_vm4, %v1910_v12 }
 0x3a5   : > { %1944 = vst.msk [vmem:[%s3196_s16 + $0xc0] sm:$0xff] %vm1919_vm4, %v1911_v22  ;;  %v1861_v1 = vpop.xlane.xlu1 %1860 }
 0x3a6   : > { %v1912_v23 = vadd.f32 %v3191_v29, %v1861_v1 }
 0x3a8   : > { %1945 = vst.msk [vmem:[%s3196_s16 + $0xc8] sm:$0xff] %vm1919_vm4, %v1912_v23 }
 0x3a9   : > { %v1864_v2 = vpop.xlane.xlu0 %1863 }
 0x3aa   : > { %v1913_v19 = vadd.f32 %v3191_v29, %v1864_v2  ;;  %v1867_v37 = vpop.xlane.xlu1 %1866 }
 0x3ab   : > { %v1914_v28 = vadd.f32 %v3191_v29, %v1867_v37 }
 0x3ac   : > { %1946 = vst.msk [vmem:[%s3196_s16 + $0xd0] sm:$0xff] %vm1919_vm4, %v1913_v19 }
 0x3ad   : > { %1947 = vst.msk [vmem:[%s3196_s16 + $0xd8] sm:$0xff] %vm1919_vm4, %v1914_v28  ;;  %v1870_v25 = vpop.xlane.xlu0 %1869 }
 0x3ae   : > { %v1915_v55 = vadd.f32 %v3191_v29, %v1870_v25 }
 0x3af   : > { %v1873_v61 = vpop.xlane.xlu1 %1872 }
 0x3b0   : > { %1948 = vst.msk [vmem:[%s3196_s16 + $0xe0] sm:$0xff] %vm1919_vm4, %v1915_v55  ;;  %v1916_v10 = vadd.f32 %v3191_v29, %v1873_v61 }
 0x3b1   : > { %v1876_v26 = vpop.xlane.xlu0 %1875 }
 0x3b2   : > { %1949 = vst.msk [vmem:[%s3196_s16 + $0xe8] sm:$0xff] %vm1919_vm4, %v1916_v10  ;;  %v1917_v27 = vadd.f32 %v3191_v29, %v1876_v26 }
 0x3b4   : > { %1950 = vst.msk [vmem:[%s3196_s16 + $0xf0] sm:$0xff] %vm1919_vm4, %v1917_v27 }
 0x3b5   : > { %v1879_v63 = vpop.xlane.xlu1 %1878 }
 0x3b6   : > { %v1918_v35 = vadd.f32 %v3191_v29, %v1879_v63 }
 0x3b8   : > { %1951 = vst.msk [vmem:[%s3196_s16 + $0xf8] sm:$0xff] %vm1919_vm4, %v1918_v35 }
 0x3b9 PF: > { %p22_p7 = scmp.ge.s32.totalorder %s2564_s21, 4   ;;  %s3331_s11 = smov %s2447_s12 }
 0x3ba   : > { %s3332_s12 = smov %s2451_s13  ;;  %s3333_s13 = smov %s2581_s29 }
 0x3bb   : > { %s3334_s14 = smov %s2564_s21  ;;  %24 = sbr.rel (!%p22_p7) target bundleno = 7 (0x7), region = 100 }
 0x3c0   :  { %1974 = vsyncpa [#allocation4], 1 }
 0x3c1   :  { %1976 = vsyncpa [#allocation4 + $0x1], 1 }
 0x3c2   :  { %1977 = vsyncpa [#allocation6], 1 }

</bundles_post_ra>
